<compile_context>
chip_gen: v6e
topology: v6e:2x2x1
jax: 0.10.0
libtpu: 0.0.40
codegen_flags: <defaults>
</compile_context>

<pallas_src>
import jax
import jax.numpy as jnp
import numpy as np
from jax import lax
from jax.experimental import pallas as pl
from jax.experimental.pallas import tpu as pltpu


def bc_kernel(v_ref, q_ref, wv_ref, bv_ref, wq_ref, bq_ref, hm_ref, hb_ref, out_ref):
    # Per grid step (one block of `bblk` batch elements):
    #   v_ref : (bblk*NV, I) bf16       q_ref : (bblk*NQ, H) bf16
    #   wv_ref: (I, K) bf16             wq_ref: (H, K) bf16     (pre-transposed: in x out)
    #   bv_ref/bq_ref: (1, K) f32       hm_ref: (G, K) f32
    #   hb_ref: (G,) f32 scalars in SMEM
    #   out_ref: (bblk, G, NQ, NV) f32  (NV on the lane dim -> lane-dense stores)
    bblk, g_dim, nq, nv = out_ref.shape

    # v_net / q_net: weight-normed Linear + ReLU. bf16 operands on the MXU, f32
    # accumulation; bias + ReLU in f32 (v5e VPU has no bf16 VALU anyway).
    v_p = jnp.maximum(
        jnp.dot(v_ref[...], wv_ref[...], preferred_element_type=jnp.float32)
        + bv_ref[...], 0.0)                                           # (bblk*NV, K) f32
    q_p = jnp.maximum(
        jnp.dot(q_ref[...], wq_ref[...], preferred_element_type=jnp.float32)
        + bq_ref[...], 0.0)                                           # (bblk*NQ, K) f32

    hm = hm_ref[...]                                                  # (G, K) f32

    # Bilinear attention logits:
    #   logits[b, g, i, j] = sum_k h_mat[g, k] * v_p[b, i, k] * q_p[b, j, k] + h_bias[g]
    # Scale q_p (small side) per glimpse in f32, cast only the matmul operands to bf16 and
    # contract K against v_p so NV lands on the lane (last) output dim. Static unroll over
    # (bblk, G): both are tiny, and the row slices start at multiples of 8 (NV, NQ are
    # multiples of 8) so they are free views (no sublane relayout).
    for bb in range(bblk):
        v_pb = v_p[bb * nv:(bb + 1) * nv, :].astype(jnp.bfloat16)     # (NV, K) bf16
        q_pb = q_p[bb * nq:(bb + 1) * nq, :]                          # (NQ, K) f32
        for g in range(g_dim):
            scaled_q = (q_pb * hm[g:g + 1, :]).astype(jnp.bfloat16)   # (NQ, K) bf16
            logits = lax.dot_general(
                scaled_q, v_pb,
                dimension_numbers=(((1,), (1,)), ((), ())),           # contract K, no transpose
                preferred_element_type=jnp.float32)                   # (NQ, NV) f32
            out_ref[bb, g, :, :] = logits + hb_ref[g]


def bc_forward(v, q, params, *, bblk=2):
    B, NV, I = v.shape
    _, NQ, H = q.shape
    K = params['wv'].shape[0]
    G = params['h_mat'].shape[1]
    # TODO(synk): pad the batch when B % bblk != 0 (toy sizes divide evenly).
    assert B % bblk == 0, "batch must be divisible by the batch block"
    nsteps = B // bblk

    # bf16 matmul operands (MXU peak is the bf16 rate; halves weight/activation DMA bytes).
    v2d = v.reshape(B * NV, I).astype(jnp.bfloat16)
    q2d = q.reshape(B * NQ, H).astype(jnp.bfloat16)
    wv_t = params['wv'].T.astype(jnp.bfloat16)           # (I, K)
    wq_t = params['wq'].T.astype(jnp.bfloat16)           # (H, K)
    bv = params['bv'].reshape(1, K)                      # f32
    bq = params['bq'].reshape(1, K)                      # f32
    hm = params['h_mat'].reshape(G, K)                   # f32
    hb = params['h_bias'].reshape(G)                     # f32 scalars -> SMEM

    flops = 2 * B * K * (NV * I + NQ * H + G * NQ * NV)
    bytes_accessed = (2 * (B * NV * I + B * NQ * H + I * K + H * K)   # bf16 inputs/weights
                      + 4 * (2 * K + G * K + G)                       # f32 biases / h_mat
                      + 4 * (B * G * NQ * NV))                        # f32 output

    const2 = lambda b: (0, 0)

    def run(single_buffer_weights):
        if single_buffer_weights:
            # Grid-invariant operands: constant index_map + single buffer -> DMA'd once,
            # no double-buffer copy (keeps the weight set inside v7x's 64 MiB VMEM).
            wspec = lambda shape: pl.BlockSpec(shape, const2,
                                               pipeline_mode=pl.Buffered(1))
        else:
            wspec = lambda shape: pl.BlockSpec(shape, const2)

        out_t = pl.pallas_call(
            bc_kernel,
            out_shape=jax.ShapeDtypeStruct((B, G, NQ, NV), jnp.float32),
            grid=(nsteps,),
            in_specs=[
                pl.BlockSpec((bblk * NV, I), lambda b: (b, 0)),       # v slab (batch-blocked)
                pl.BlockSpec((bblk * NQ, H), lambda b: (b, 0)),       # q slab (batch-blocked)
                wspec((I, K)),                                        # wv_t (VMEM-resident)
                wspec((1, K)),                                        # bv
                wspec((H, K)),                                        # wq_t (VMEM-resident)
                wspec((1, K)),                                        # bq
                wspec((G, K)),                                        # h_mat
                pl.BlockSpec(memory_space=pltpu.MemorySpace.SMEM),    # h_bias scalars
            ],
            out_specs=pl.BlockSpec((bblk, G, NQ, NV), lambda b: (b, 0, 0, 0)),
            compiler_params=pltpu.CompilerParams(
                dimension_semantics=("parallel",),
                vmem_limit_bytes=48 * 1024 * 1024,
            ),
            cost_estimate=pl.CostEstimate(
                flops=flops, transcendentals=0, bytes_accessed=bytes_accessed),
        )(v2d, q2d, wv_t, bv, wq_t, bq, hm, hb)
        return jax.block_until_ready(out_t)

    try:
        out_t = run(single_buffer_weights=True)
    except Exception:
        # pipeline_mode=pl.Buffered unsupported in this jax build -> default buffering.
        out_t = run(single_buffer_weights=False)

    # Kernel emits (B, G, NQ, NV) (lane-dense NV); restore the module layout in XLA land.
    return out_t.transpose(0, 1, 3, 2)


def bc_reference(v, q, params):
    # Pure-f32 mirror of BC.forward (eval mode) — the PyTorch-equivalent math.
    v_ = jax.nn.relu(v @ params['wv'].T + params['bv'])
    q_ = jax.nn.relu(q @ params['wq'].T + params['bq'])
    return jnp.einsum('xgyk,bvk,bqk->bgvq', params['h_mat'], v_, q_) + params['h_bias']


def bc_reference_bf16(v, q, params):
    # Mirror of the kernel's exact arithmetic (bf16 matmul operands, f32 accumulation,
    # f32 elementwise) for a tight numerical check.
    K = params['wv'].shape[0]
    G = params['h_mat'].shape[1]
    wv_t = params['wv'].T.astype(jnp.bfloat16)
    wq_t = params['wq'].T.astype(jnp.bfloat16)
    v_p = jnp.maximum(
        jnp.einsum('bvi,ik->bvk', v.astype(jnp.bfloat16), wv_t,
                   preferred_element_type=jnp.float32) + params['bv'].reshape(1, 1, K), 0.0)
    q_p = jnp.maximum(
        jnp.einsum('bqh,hk->bqk', q.astype(jnp.bfloat16), wq_t,
                   preferred_element_type=jnp.float32) + params['bq'].reshape(1, 1, K), 0.0)
    hm = params['h_mat'].reshape(G, K)
    scaled_q = (q_p[:, None, :, :] * hm[None, :, None, :]).astype(jnp.bfloat16)  # (B,G,NQ,K)
    logits_t = jnp.einsum('bgqk,bvk->bgqv', scaled_q, v_p.astype(jnp.bfloat16),
                          preferred_element_type=jnp.float32)
    logits_t = logits_t + params['h_bias'].reshape(1, G, 1, 1)
    return logits_t.transpose(0, 1, 3, 2)                                        # (B,G,NV,NQ)


def init_params(key, img_feat, hidden, ba_hidden, glimpse):
    def linear(k, out_dim, in_dim):
        kw, kb = jax.random.split(k)
        bound = 1.0 / np.sqrt(in_dim)
        w = jax.random.uniform(kw, (out_dim, in_dim), jnp.float32, -bound, bound)
        b = jax.random.uniform(kb, (1, out_dim), jnp.float32, -bound, bound)
        return w, b

    ks = jax.random.split(key, 4)
    wv, bv = linear(ks[0], ba_hidden, img_feat)     # v_net : IMG_FEAT -> BA_HIDDEN
    wq, bq = linear(ks[1], ba_hidden, hidden)       # q_net : HIDDEN   -> BA_HIDDEN
    h_mat = jax.random.normal(ks[2], (1, glimpse, 1, ba_hidden), jnp.float32)
    h_bias = jax.random.normal(ks[3], (1, glimpse, 1, 1), jnp.float32)
    return {'wv': wv, 'bv': bv, 'wq': wq, 'bq': bq, 'h_mat': h_mat, 'h_bias': h_bias}


if __name__ == "__main__":
    B, NV, NQ = 4, 8, 8                       # batch, image objects, question tokens
    IMG_FEAT, HIDDEN, BA_HIDDEN, GLIMPSE = 64, 32, 128, 2

    key = jax.random.PRNGKey(0)
    k_v, k_q, k_p = jax.random.split(key, 3)
    v = jax.random.normal(k_v, (B, NV, IMG_FEAT), jnp.float32)
    q = jax.random.normal(k_q, (B, NQ, HIDDEN), jnp.float32)
    params = init_params(k_p, IMG_FEAT, HIDDEN, BA_HIDDEN, GLIMPSE)

    out = jax.block_until_ready(bc_forward(v, q, params, bblk=2))
    assert out.shape == (B, GLIMPSE, NV, NQ) and out.dtype == jnp.float32

    # Tight check vs a reference doing identical bf16-operand / f32-accumulate math.
    ref_bf16 = jax.block_until_ready(bc_reference_bf16(v, q, params))
    np.testing.assert_allclose(np.asarray(out), np.asarray(ref_bf16), rtol=1e-3, atol=1e-3)

    # Loose check vs the full-f32 PyTorch-equivalent math (bf16 MXU operand rounding).
    ref_f32 = jax.block_until_ready(bc_reference(v, q, params))
    np.testing.assert_allclose(np.asarray(out), np.asarray(ref_f32), rtol=5e-2, atol=5e-2)

    print("KERNEL_OK")
</pallas_src>

<mosaic_0001>
module attributes {stable_mosaic.version = 11 : i64} {
  func.func @bc_kernel(%arg0: i32, %arg1: memref<16x64xbf16, #tpu.memory_space<vmem>>, %arg2: memref<16x32xbf16, #tpu.memory_space<vmem>>, %arg3: memref<64x128xbf16, #tpu.memory_space<vmem>>, %arg4: memref<1x128xf32, #tpu.memory_space<vmem>>, %arg5: memref<32x128xbf16, #tpu.memory_space<vmem>>, %arg6: memref<1x128xf32, #tpu.memory_space<vmem>>, %arg7: memref<2x128xf32, #tpu.memory_space<vmem>>, %arg8: memref<2xf32, #tpu.memory_space<smem>>, %arg9: memref<2x2x8x8xf32, #tpu.memory_space<vmem>>) attributes {dimension_semantics = [#tpu.dimension_semantics<parallel>], iteration_bounds = array<i64: 2>, scalar_prefetch = 0 : i64, scratch_operands = 0 : i64, tpu.core_type = #tpu.core_type<tc>, window_params = [{transform_indices = @transform_0, window_bounds = array<i64: 16, 64>}, {transform_indices = @transform_1, window_bounds = array<i64: 16, 32>}, {pipeline_mode = #tpu.pipeline_mode<synchronous>, transform_indices = @transform_2, window_bounds = array<i64: 64, 128>}, {pipeline_mode = #tpu.pipeline_mode<synchronous>, transform_indices = @transform_3, window_bounds = array<i64: 1, 128>}, {pipeline_mode = #tpu.pipeline_mode<synchronous>, transform_indices = @transform_4, window_bounds = array<i64: 32, 128>}, {pipeline_mode = #tpu.pipeline_mode<synchronous>, transform_indices = @transform_5, window_bounds = array<i64: 1, 128>}, {pipeline_mode = #tpu.pipeline_mode<synchronous>, transform_indices = @transform_6, window_bounds = array<i64: 2, 128>}, {transform_indices = @transform_7, window_bounds = array<i64: 2>}, {transform_indices = @transform_8, window_bounds = array<i64: 2, 2, 8, 8>}]} {
    %c0 = arith.constant 0 : index
    %c0_0 = arith.constant 0 : index
    %0 = vector.load %arg1[%c0, %c0_0] : memref<16x64xbf16, #tpu.memory_space<vmem>>, vector<16x64xbf16>
    %c0_1 = arith.constant 0 : index
    %c0_2 = arith.constant 0 : index
    %1 = vector.load %arg3[%c0_1, %c0_2] : memref<64x128xbf16, #tpu.memory_space<vmem>>, vector<64x128xbf16>
    %cst = arith.constant dense<0.000000e+00> : vector<16x128xf32>
    %2 = tpu.matmul %0, %1, %cst {dimension_numbers = #tpu.dot_dimension_numbers<[1], [0], [0], [1], [0, 0, 1, 1], [], []>} : vector<16x64xbf16>, vector<64x128xbf16>, vector<16x128xf32> -> vector<16x128xf32>
    %c0_3 = arith.constant 0 : index
    %c0_4 = arith.constant 0 : index
    %3 = vector.load %arg4[%c0_3, %c0_4] : memref<1x128xf32, #tpu.memory_space<vmem>>, vector<1x128xf32>
    %4 = vector.broadcast %3 : vector<1x128xf32> to vector<16x128xf32>
    %5 = arith.addf %2, %4 : vector<16x128xf32>
    %cst_5 = arith.constant 0.000000e+00 : f32
    %6 = vector.broadcast %cst_5 : f32 to vector<16x128xf32>
    %7 = arith.maximumf %5, %6 : vector<16x128xf32>
    %c0_6 = arith.constant 0 : index
    %c0_7 = arith.constant 0 : index
    %8 = vector.load %arg2[%c0_6, %c0_7] : memref<16x32xbf16, #tpu.memory_space<vmem>>, vector<16x32xbf16>
    %c0_8 = arith.constant 0 : index
    %c0_9 = arith.constant 0 : index
    %9 = vector.load %arg5[%c0_8, %c0_9] : memref<32x128xbf16, #tpu.memory_space<vmem>>, vector<32x128xbf16>
    %cst_10 = arith.constant dense<0.000000e+00> : vector<16x128xf32>
    %10 = tpu.matmul %8, %9, %cst_10 {dimension_numbers = #tpu.dot_dimension_numbers<[1], [0], [0], [1], [0, 0, 1, 1], [], []>} : vector<16x32xbf16>, vector<32x128xbf16>, vector<16x128xf32> -> vector<16x128xf32>
    %c0_11 = arith.constant 0 : index
    %c0_12 = arith.constant 0 : index
    %11 = vector.load %arg6[%c0_11, %c0_12] : memref<1x128xf32, #tpu.memory_space<vmem>>, vector<1x128xf32>
    %12 = vector.broadcast %11 : vector<1x128xf32> to vector<16x128xf32>
    %13 = arith.addf %10, %12 : vector<16x128xf32>
    %cst_13 = arith.constant 0.000000e+00 : f32
    %14 = vector.broadcast %cst_13 : f32 to vector<16x128xf32>
    %15 = arith.maximumf %13, %14 : vector<16x128xf32>
    %c0_14 = arith.constant 0 : index
    %c0_15 = arith.constant 0 : index
    %16 = vector.load %arg7[%c0_14, %c0_15] : memref<2x128xf32, #tpu.memory_space<vmem>>, vector<2x128xf32>
    %17 = vector.extract_strided_slice %7 {offsets = [0, 0], sizes = [8, 128], strides = [1, 1]} : vector<16x128xf32> to vector<8x128xf32>
    %18 = arith.truncf %17 : vector<8x128xf32> to vector<8x128xbf16>
    %19 = vector.extract_strided_slice %15 {offsets = [0, 0], sizes = [8, 128], strides = [1, 1]} : vector<16x128xf32> to vector<8x128xf32>
    %20 = vector.extract_strided_slice %16 {offsets = [0, 0], sizes = [1, 128], strides = [1, 1]} : vector<2x128xf32> to vector<1x128xf32>
    %21 = vector.broadcast %20 : vector<1x128xf32> to vector<8x128xf32>
    %22 = arith.mulf %19, %21 : vector<8x128xf32>
    %23 = arith.truncf %22 : vector<8x128xf32> to vector<8x128xbf16>
    %cst_16 = arith.constant dense<0.000000e+00> : vector<8x8xf32>
    %24 = tpu.matmul %23, %18, %cst_16 {dimension_numbers = #tpu.dot_dimension_numbers<[1], [1], [0], [0], [0, 0, 1, 0], [], []>} : vector<8x128xbf16>, vector<8x128xbf16>, vector<8x8xf32> -> vector<8x8xf32>
    %c0_17 = arith.constant 0 : index
    %25 = memref.load %arg8[%c0_17] : memref<2xf32, #tpu.memory_space<smem>>
    %26 = vector.broadcast %25 : f32 to vector<8x8xf32>
    %27 = arith.addf %24, %26 : vector<8x8xf32>
    %c0_18 = arith.constant 0 : index
    %c0_19 = arith.constant 0 : index
    %c0_20 = arith.constant 0 : index
    %c0_21 = arith.constant 0 : index
    %28 = vector.load %arg9[%c0_18, %c0_19, %c0_20, %c0_21] : memref<2x2x8x8xf32, #tpu.memory_space<vmem>>, vector<1x1x8x8xf32>
    %29 = vector.shape_cast %28 : vector<1x1x8x8xf32> to vector<8x8xf32>
    %30 = vector.shape_cast %27 : vector<8x8xf32> to vector<1x1x8x8xf32>
    tpu.vector_store %arg9[%c0_18, %c0_19, %c0_20, %c0_21], %30 {strides = array<i32>} : memref<2x2x8x8xf32, #tpu.memory_space<vmem>>, vector<1x1x8x8xf32>,
    %31 = vector.extract_strided_slice %16 {offsets = [1, 0], sizes = [1, 128], strides = [1, 1]} : vector<2x128xf32> to vector<1x128xf32>
    %32 = vector.broadcast %31 : vector<1x128xf32> to vector<8x128xf32>
    %33 = arith.mulf %19, %32 : vector<8x128xf32>
    %34 = arith.truncf %33 : vector<8x128xf32> to vector<8x128xbf16>
    %cst_22 = arith.constant dense<0.000000e+00> : vector<8x8xf32>
    %35 = tpu.matmul %34, %18, %cst_22 {dimension_numbers = #tpu.dot_dimension_numbers<[1], [1], [0], [0], [0, 0, 1, 0], [], []>} : vector<8x128xbf16>, vector<8x128xbf16>, vector<8x8xf32> -> vector<8x8xf32>
    %c1 = arith.constant 1 : index
    %36 = memref.load %arg8[%c1] : memref<2xf32, #tpu.memory_space<smem>>
    %37 = vector.broadcast %36 : f32 to vector<8x8xf32>
    %38 = arith.addf %35, %37 : vector<8x8xf32>
    %c0_23 = arith.constant 0 : index
    %c1_24 = arith.constant 1 : index
    %c0_25 = arith.constant 0 : index
    %c0_26 = arith.constant 0 : index
    %39 = vector.load %arg9[%c0_23, %c1_24, %c0_25, %c0_26] : memref<2x2x8x8xf32, #tpu.memory_space<vmem>>, vector<1x1x8x8xf32>
    %40 = vector.shape_cast %39 : vector<1x1x8x8xf32> to vector<8x8xf32>
    %41 = vector.shape_cast %38 : vector<8x8xf32> to vector<1x1x8x8xf32>
    tpu.vector_store %arg9[%c0_23, %c1_24, %c0_25, %c0_26], %41 {strides = array<i32>} : memref<2x2x8x8xf32, #tpu.memory_space<vmem>>, vector<1x1x8x8xf32>,
    %42 = vector.extract_strided_slice %7 {offsets = [8, 0], sizes = [8, 128], strides = [1, 1]} : vector<16x128xf32> to vector<8x128xf32>
    %43 = arith.truncf %42 : vector<8x128xf32> to vector<8x128xbf16>
    %44 = vector.extract_strided_slice %15 {offsets = [8, 0], sizes = [8, 128], strides = [1, 1]} : vector<16x128xf32> to vector<8x128xf32>
    %45 = vector.extract_strided_slice %16 {offsets = [0, 0], sizes = [1, 128], strides = [1, 1]} : vector<2x128xf32> to vector<1x128xf32>
    %46 = vector.broadcast %45 : vector<1x128xf32> to vector<8x128xf32>
    %47 = arith.mulf %44, %46 : vector<8x128xf32>
    %48 = arith.truncf %47 : vector<8x128xf32> to vector<8x128xbf16>
    %cst_27 = arith.constant dense<0.000000e+00> : vector<8x8xf32>
    %49 = tpu.matmul %48, %43, %cst_27 {dimension_numbers = #tpu.dot_dimension_numbers<[1], [1], [0], [0], [0, 0, 1, 0], [], []>} : vector<8x128xbf16>, vector<8x128xbf16>, vector<8x8xf32> -> vector<8x8xf32>
    %c0_28 = arith.constant 0 : index
    %50 = memref.load %arg8[%c0_28] : memref<2xf32, #tpu.memory_space<smem>>
    %51 = vector.broadcast %50 : f32 to vector<8x8xf32>
    %52 = arith.addf %49, %51 : vector<8x8xf32>
    %c1_29 = arith.constant 1 : index
    %c0_30 = arith.constant 0 : index
    %c0_31 = arith.constant 0 : index
    %c0_32 = arith.constant 0 : index
    %53 = vector.load %arg9[%c1_29, %c0_30, %c0_31, %c0_32] : memref<2x2x8x8xf32, #tpu.memory_space<vmem>>, vector<1x1x8x8xf32>
    %54 = vector.shape_cast %53 : vector<1x1x8x8xf32> to vector<8x8xf32>
    %55 = vector.shape_cast %52 : vector<8x8xf32> to vector<1x1x8x8xf32>
    tpu.vector_store %arg9[%c1_29, %c0_30, %c0_31, %c0_32], %55 {strides = array<i32>} : memref<2x2x8x8xf32, #tpu.memory_space<vmem>>, vector<1x1x8x8xf32>,
    %56 = vector.extract_strided_slice %16 {offsets = [1, 0], sizes = [1, 128], strides = [1, 1]} : vector<2x128xf32> to vector<1x128xf32>
    %57 = vector.broadcast %56 : vector<1x128xf32> to vector<8x128xf32>
    %58 = arith.mulf %44, %57 : vector<8x128xf32>
    %59 = arith.truncf %58 : vector<8x128xf32> to vector<8x128xbf16>
    %cst_33 = arith.constant dense<0.000000e+00> : vector<8x8xf32>
    %60 = tpu.matmul %59, %43, %cst_33 {dimension_numbers = #tpu.dot_dimension_numbers<[1], [1], [0], [0], [0, 0, 1, 0], [], []>} : vector<8x128xbf16>, vector<8x128xbf16>, vector<8x8xf32> -> vector<8x8xf32>
    %c1_34 = arith.constant 1 : index
    %61 = memref.load %arg8[%c1_34] : memref<2xf32, #tpu.memory_space<smem>>
    %62 = vector.broadcast %61 : f32 to vector<8x8xf32>
    %63 = arith.addf %60, %62 : vector<8x8xf32>
    %c1_35 = arith.constant 1 : index
    %c1_36 = arith.constant 1 : index
    %c0_37 = arith.constant 0 : index
    %c0_38 = arith.constant 0 : index
    %64 = vector.load %arg9[%c1_35, %c1_36, %c0_37, %c0_38] : memref<2x2x8x8xf32, #tpu.memory_space<vmem>>, vector<1x1x8x8xf32>
    %65 = vector.shape_cast %64 : vector<1x1x8x8xf32> to vector<8x8xf32>
    %66 = vector.shape_cast %63 : vector<8x8xf32> to vector<1x1x8x8xf32>
    tpu.vector_store %arg9[%c1_35, %c1_36, %c0_37, %c0_38], %66 {strides = array<i32>} : memref<2x2x8x8xf32, #tpu.memory_space<vmem>>, vector<1x1x8x8xf32>,
    return
  }
  func.func @transform_0(%arg0: i32) -> (i32, i32) {
    %c0_i32 = arith.constant 0 : i32
    %c0_i32_0 = arith.constant 0 : i32
    return %arg0, %c0_i32 : i32, i32
  }
  func.func @transform_1(%arg0: i32) -> (i32, i32) {
    %c0_i32 = arith.constant 0 : i32
    %c0_i32_0 = arith.constant 0 : i32
    return %arg0, %c0_i32 : i32, i32
  }
  func.func @transform_2(%arg0: i32) -> (i32, i32) {
    %c0_i32 = arith.constant 0 : i32
    %c0_i32_0 = arith.constant 0 : i32
    %c0_i32_1 = arith.constant 0 : i32
    return %c0_i32, %c0_i32_0 : i32, i32
  }
  func.func @transform_3(%arg0: i32) -> (i32, i32) {
    %c0_i32 = arith.constant 0 : i32
    %c0_i32_0 = arith.constant 0 : i32
    %c0_i32_1 = arith.constant 0 : i32
    return %c0_i32, %c0_i32_0 : i32, i32
  }
  func.func @transform_4(%arg0: i32) -> (i32, i32) {
    %c0_i32 = arith.constant 0 : i32
    %c0_i32_0 = arith.constant 0 : i32
    %c0_i32_1 = arith.constant 0 : i32
    return %c0_i32, %c0_i32_0 : i32, i32
  }
  func.func @transform_5(%arg0: i32) -> (i32, i32) {
    %c0_i32 = arith.constant 0 : i32
    %c0_i32_0 = arith.constant 0 : i32
    %c0_i32_1 = arith.constant 0 : i32
    return %c0_i32, %c0_i32_0 : i32, i32
  }
  func.func @transform_6(%arg0: i32) -> (i32, i32) {
    %c0_i32 = arith.constant 0 : i32
    %c0_i32_0 = arith.constant 0 : i32
    %c0_i32_1 = arith.constant 0 : i32
    return %c0_i32, %c0_i32_0 : i32, i32
  }
  func.func @transform_7(%arg0: i32) -> i32 {
    %c0_i32 = arith.constant 0 : i32
    %c0_i32_0 = arith.constant 0 : i32
    return %c0_i32 : i32
  }
  func.func @transform_8(%arg0: i32) -> (i32, i32, i32, i32) {
    %c0_i32 = arith.constant 0 : i32
    %c0_i32_0 = arith.constant 0 : i32
    %c0_i32_1 = arith.constant 0 : i32
    %c0_i32_2 = arith.constant 0 : i32
    return %arg0, %c0_i32, %c0_i32_0, %c0_i32_1 : i32, i32, i32, i32
  }
}

module attributes {stable_mosaic.version = 11 : i64} {
  func.func @bc_kernel(%arg0: i32, %arg1: memref<16x64xbf16, #tpu.memory_space<vmem>>, %arg2: memref<16x32xbf16, #tpu.memory_space<vmem>>, %arg3: memref<64x128xbf16, #tpu.memory_space<vmem>>, %arg4: memref<1x128xf32, #tpu.memory_space<vmem>>, %arg5: memref<32x128xbf16, #tpu.memory_space<vmem>>, %arg6: memref<1x128xf32, #tpu.memory_space<vmem>>, %arg7: memref<2x128xf32, #tpu.memory_space<vmem>>, %arg8: memref<2xf32, #tpu.memory_space<smem>>, %arg9: memref<2x2x8x8xf32, #tpu.memory_space<vmem>>) attributes {dimension_semantics = [#tpu.dimension_semantics<parallel>], iteration_bounds = array<i64: 2>, scalar_prefetch = 0 : i64, scratch_operands = 0 : i64, tpu.core_type = #tpu.core_type<tc>, window_params = [{transform_indices = @transform_0, window_bounds = array<i64: 16, 64>}, {transform_indices = @transform_1, window_bounds = array<i64: 16, 32>}, {pipeline_mode = #tpu.pipeline_mode<synchronous>, transform_indices = @transform_2, window_bounds = array<i64: 64, 128>}, {pipeline_mode = #tpu.pipeline_mode<synchronous>, transform_indices = @transform_3, window_bounds = array<i64: 1, 128>}, {pipeline_mode = #tpu.pipeline_mode<synchronous>, transform_indices = @transform_4, window_bounds = array<i64: 32, 128>}, {pipeline_mode = #tpu.pipeline_mode<synchronous>, transform_indices = @transform_5, window_bounds = array<i64: 1, 128>}, {pipeline_mode = #tpu.pipeline_mode<synchronous>, transform_indices = @transform_6, window_bounds = array<i64: 2, 128>}, {transform_indices = @transform_7, window_bounds = array<i64: 2>}, {transform_indices = @transform_8, window_bounds = array<i64: 2, 2, 8, 8>}]} {
    %c0 = arith.constant 0 : index
    %c0_0 = arith.constant 0 : index
    %0 = vector.load %arg1[%c0, %c0_0] : memref<16x64xbf16, #tpu.memory_space<vmem>>, vector<16x64xbf16>
    %c0_1 = arith.constant 0 : index
    %c0_2 = arith.constant 0 : index
    %1 = vector.load %arg3[%c0_1, %c0_2] : memref<64x128xbf16, #tpu.memory_space<vmem>>, vector<64x128xbf16>
    %cst = arith.constant dense<0.000000e+00> : vector<16x128xf32>
    %2 = tpu.matmul %0, %1, %cst {dimension_numbers = #tpu.dot_dimension_numbers<[1], [0], [0], [1], [0, 0, 1, 1], [], []>} : vector<16x64xbf16>, vector<64x128xbf16>, vector<16x128xf32> -> vector<16x128xf32>
    %c0_3 = arith.constant 0 : index
    %c0_4 = arith.constant 0 : index
    %3 = vector.load %arg4[%c0_3, %c0_4] : memref<1x128xf32, #tpu.memory_space<vmem>>, vector<1x128xf32>
    %4 = vector.broadcast %3 : vector<1x128xf32> to vector<16x128xf32>
    %5 = arith.addf %2, %4 : vector<16x128xf32>
    %cst_5 = arith.constant 0.000000e+00 : f32
    %6 = vector.broadcast %cst_5 : f32 to vector<16x128xf32>
    %7 = arith.maximumf %5, %6 : vector<16x128xf32>
    %c0_6 = arith.constant 0 : index
    %c0_7 = arith.constant 0 : index
    %8 = vector.load %arg2[%c0_6, %c0_7] : memref<16x32xbf16, #tpu.memory_space<vmem>>, vector<16x32xbf16>
    %c0_8 = arith.constant 0 : index
    %c0_9 = arith.constant 0 : index
    %9 = vector.load %arg5[%c0_8, %c0_9] : memref<32x128xbf16, #tpu.memory_space<vmem>>, vector<32x128xbf16>
    %cst_10 = arith.constant dense<0.000000e+00> : vector<16x128xf32>
    %10 = tpu.matmul %8, %9, %cst_10 {dimension_numbers = #tpu.dot_dimension_numbers<[1], [0], [0], [1], [0, 0, 1, 1], [], []>} : vector<16x32xbf16>, vector<32x128xbf16>, vector<16x128xf32> -> vector<16x128xf32>
    %c0_11 = arith.constant 0 : index
    %c0_12 = arith.constant 0 : index
    %11 = vector.load %arg6[%c0_11, %c0_12] : memref<1x128xf32, #tpu.memory_space<vmem>>, vector<1x128xf32>
    %12 = vector.broadcast %11 : vector<1x128xf32> to vector<16x128xf32>
    %13 = arith.addf %10, %12 : vector<16x128xf32>
    %cst_13 = arith.constant 0.000000e+00 : f32
    %14 = vector.broadcast %cst_13 : f32 to vector<16x128xf32>
    %15 = arith.maximumf %13, %14 : vector<16x128xf32>
    %c0_14 = arith.constant 0 : index
    %c0_15 = arith.constant 0 : index
    %16 = vector.load %arg7[%c0_14, %c0_15] : memref<2x128xf32, #tpu.memory_space<vmem>>, vector<2x128xf32>
    %17 = vector.extract_strided_slice %7 {offsets = [0, 0], sizes = [8, 128], strides = [1, 1]} : vector<16x128xf32> to vector<8x128xf32>
    %18 = arith.truncf %17 : vector<8x128xf32> to vector<8x128xbf16>
    %19 = vector.extract_strided_slice %15 {offsets = [0, 0], sizes = [8, 128], strides = [1, 1]} : vector<16x128xf32> to vector<8x128xf32>
    %20 = vector.extract_strided_slice %16 {offsets = [0, 0], sizes = [1, 128], strides = [1, 1]} : vector<2x128xf32> to vector<1x128xf32>
    %21 = vector.broadcast %20 : vector<1x128xf32> to vector<8x128xf32>
    %22 = arith.mulf %19, %21 : vector<8x128xf32>
    %23 = arith.truncf %22 : vector<8x128xf32> to vector<8x128xbf16>
    %cst_16 = arith.constant dense<0.000000e+00> : vector<8x8xf32>
    %24 = tpu.matmul %23, %18, %cst_16 {dimension_numbers = #tpu.dot_dimension_numbers<[1], [1], [0], [0], [0, 0, 1, 0], [], []>} : vector<8x128xbf16>, vector<8x128xbf16>, vector<8x8xf32> -> vector<8x8xf32>
    %c0_17 = arith.constant 0 : index
    %25 = memref.load %arg8[%c0_17] : memref<2xf32, #tpu.memory_space<smem>>
    %26 = vector.broadcast %25 : f32 to vector<8x8xf32>
    %27 = arith.addf %24, %26 : vector<8x8xf32>
    %c0_18 = arith.constant 0 : index
    %c0_19 = arith.constant 0 : index
    %c0_20 = arith.constant 0 : index
    %c0_21 = arith.constant 0 : index
    %28 = vector.load %arg9[%c0_18, %c0_19, %c0_20, %c0_21] : memref<2x2x8x8xf32, #tpu.memory_space<vmem>>, vector<1x1x8x8xf32>
    %29 = vector.shape_cast %28 : vector<1x1x8x8xf32> to vector<8x8xf32>
    %30 = vector.shape_cast %27 : vector<8x8xf32> to vector<1x1x8x8xf32>
    tpu.vector_store %arg9[%c0_18, %c0_19, %c0_20, %c0_21], %30 {strides = array<i32>} : memref<2x2x8x8xf32, #tpu.memory_space<vmem>>, vector<1x1x8x8xf32>,
    %31 = vector.extract_strided_slice %16 {offsets = [1, 0], sizes = [1, 128], strides = [1, 1]} : vector<2x128xf32> to vector<1x128xf32>
    %32 = vector.broadcast %31 : vector<1x128xf32> to vector<8x128xf32>
    %33 = arith.mulf %19, %32 : vector<8x128xf32>
    %34 = arith.truncf %33 : vector<8x128xf32> to vector<8x128xbf16>
    %cst_22 = arith.constant dense<0.000000e+00> : vector<8x8xf32>
    %35 = tpu.matmul %34, %18, %cst_22 {dimension_numbers = #tpu.dot_dimension_numbers<[1], [1], [0], [0], [0, 0, 1, 0], [], []>} : vector<8x128xbf16>, vector<8x128xbf16>, vector<8x8xf32> -> vector<8x8xf32>
    %c1 = arith.constant 1 : index
    %36 = memref.load %arg8[%c1] : memref<2xf32, #tpu.memory_space<smem>>
    %37 = vector.broadcast %36 : f32 to vector<8x8xf32>
    %38 = arith.addf %35, %37 : vector<8x8xf32>
    %c0_23 = arith.constant 0 : index
    %c1_24 = arith.constant 1 : index
    %c0_25 = arith.constant 0 : index
    %c0_26 = arith.constant 0 : index
    %39 = vector.load %arg9[%c0_23, %c1_24, %c0_25, %c0_26] : memref<2x2x8x8xf32, #tpu.memory_space<vmem>>, vector<1x1x8x8xf32>
    %40 = vector.shape_cast %39 : vector<1x1x8x8xf32> to vector<8x8xf32>
    %41 = vector.shape_cast %38 : vector<8x8xf32> to vector<1x1x8x8xf32>
    tpu.vector_store %arg9[%c0_23, %c1_24, %c0_25, %c0_26], %41 {strides = array<i32>} : memref<2x2x8x8xf32, #tpu.memory_space<vmem>>, vector<1x1x8x8xf32>,
    %42 = vector.extract_strided_slice %7 {offsets = [8, 0], sizes = [8, 128], strides = [1, 1]} : vector<16x128xf32> to vector<8x128xf32>
    %43 = arith.truncf %42 : vector<8x128xf32> to vector<8x128xbf16>
    %44 = vector.extract_strided_slice %15 {offsets = [8, 0], sizes = [8, 128], strides = [1, 1]} : vector<16x128xf32> to vector<8x128xf32>
    %45 = vector.extract_strided_slice %16 {offsets = [0, 0], sizes = [1, 128], strides = [1, 1]} : vector<2x128xf32> to vector<1x128xf32>
    %46 = vector.broadcast %45 : vector<1x128xf32> to vector<8x128xf32>
    %47 = arith.mulf %44, %46 : vector<8x128xf32>
    %48 = arith.truncf %47 : vector<8x128xf32> to vector<8x128xbf16>
    %cst_27 = arith.constant dense<0.000000e+00> : vector<8x8xf32>
    %49 = tpu.matmul %48, %43, %cst_27 {dimension_numbers = #tpu.dot_dimension_numbers<[1], [1], [0], [0], [0, 0, 1, 0], [], []>} : vector<8x128xbf16>, vector<8x128xbf16>, vector<8x8xf32> -> vector<8x8xf32>
    %c0_28 = arith.constant 0 : index
    %50 = memref.load %arg8[%c0_28] : memref<2xf32, #tpu.memory_space<smem>>
    %51 = vector.broadcast %50 : f32 to vector<8x8xf32>
    %52 = arith.addf %49, %51 : vector<8x8xf32>
    %c1_29 = arith.constant 1 : index
    %c0_30 = arith.constant 0 : index
    %c0_31 = arith.constant 0 : index
    %c0_32 = arith.constant 0 : index
    %53 = vector.load %arg9[%c1_29, %c0_30, %c0_31, %c0_32] : memref<2x2x8x8xf32, #tpu.memory_space<vmem>>, vector<1x1x8x8xf32>
    %54 = vector.shape_cast %53 : vector<1x1x8x8xf32> to vector<8x8xf32>
    %55 = vector.shape_cast %52 : vector<8x8xf32> to vector<1x1x8x8xf32>
    tpu.vector_store %arg9[%c1_29, %c0_30, %c0_31, %c0_32], %55 {strides = array<i32>} : memref<2x2x8x8xf32, #tpu.memory_space<vmem>>, vector<1x1x8x8xf32>,
    %56 = vector.extract_strided_slice %16 {offsets = [1, 0], sizes = [1, 128], strides = [1, 1]} : vector<2x128xf32> to vector<1x128xf32>
    %57 = vector.broadcast %56 : vector<1x128xf32> to vector<8x128xf32>
    %58 = arith.mulf %44, %57 : vector<8x128xf32>
    %59 = arith.truncf %58 : vector<8x128xf32> to vector<8x128xbf16>
    %cst_33 = arith.constant dense<0.000000e+00> : vector<8x8xf32>
    %60 = tpu.matmul %59, %43, %cst_33 {dimension_numbers = #tpu.dot_dimension_numbers<[1], [1], [0], [0], [0, 0, 1, 0], [], []>} : vector<8x128xbf16>, vector<8x128xbf16>, vector<8x8xf32> -> vector<8x8xf32>
    %c1_34 = arith.constant 1 : index
    %61 = memref.load %arg8[%c1_34] : memref<2xf32, #tpu.memory_space<smem>>
    %62 = vector.broadcast %61 : f32 to vector<8x8xf32>
    %63 = arith.addf %60, %62 : vector<8x8xf32>
    %c1_35 = arith.constant 1 : index
    %c1_36 = arith.constant 1 : index
    %c0_37 = arith.constant 0 : index
    %c0_38 = arith.constant 0 : index
    %64 = vector.load %arg9[%c1_35, %c1_36, %c0_37, %c0_38] : memref<2x2x8x8xf32, #tpu.memory_space<vmem>>, vector<1x1x8x8xf32>
    %65 = vector.shape_cast %64 : vector<1x1x8x8xf32> to vector<8x8xf32>
    %66 = vector.shape_cast %63 : vector<8x8xf32> to vector<1x1x8x8xf32>
    tpu.vector_store %arg9[%c1_35, %c1_36, %c0_37, %c0_38], %66 {strides = array<i32>} : memref<2x2x8x8xf32, #tpu.memory_space<vmem>>, vector<1x1x8x8xf32>,
    return
  }
  func.func @transform_0(%arg0: i32) -> (i32, i32) {
    %c0_i32 = arith.constant 0 : i32
    %c0_i32_0 = arith.constant 0 : i32
    return %arg0, %c0_i32 : i32, i32
  }
  func.func @transform_1(%arg0: i32) -> (i32, i32) {
    %c0_i32 = arith.constant 0 : i32
    %c0_i32_0 = arith.constant 0 : i32
    return %arg0, %c0_i32 : i32, i32
  }
  func.func @transform_2(%arg0: i32) -> (i32, i32) {
    %c0_i32 = arith.constant 0 : i32
    %c0_i32_0 = arith.constant 0 : i32
    %c0_i32_1 = arith.constant 0 : i32
    return %c0_i32, %c0_i32_0 : i32, i32
  }
  func.func @transform_3(%arg0: i32) -> (i32, i32) {
    %c0_i32 = arith.constant 0 : i32
    %c0_i32_0 = arith.constant 0 : i32
    %c0_i32_1 = arith.constant 0 : i32
    return %c0_i32, %c0_i32_0 : i32, i32
  }
  func.func @transform_4(%arg0: i32) -> (i32, i32) {
    %c0_i32 = arith.constant 0 : i32
    %c0_i32_0 = arith.constant 0 : i32
    %c0_i32_1 = arith.constant 0 : i32
    return %c0_i32, %c0_i32_0 : i32, i32
  }
  func.func @transform_5(%arg0: i32) -> (i32, i32) {
    %c0_i32 = arith.constant 0 : i32
    %c0_i32_0 = arith.constant 0 : i32
    %c0_i32_1 = arith.constant 0 : i32
    return %c0_i32, %c0_i32_0 : i32, i32
  }
  func.func @transform_6(%arg0: i32) -> (i32, i32) {
    %c0_i32 = arith.constant 0 : i32
    %c0_i32_0 = arith.constant 0 : i32
    %c0_i32_1 = arith.constant 0 : i32
    return %c0_i32, %c0_i32_0 : i32, i32
  }
  func.func @transform_7(%arg0: i32) -> i32 {
    %c0_i32 = arith.constant 0 : i32
    %c0_i32_0 = arith.constant 0 : i32
    return %c0_i32 : i32
  }
  func.func @transform_8(%arg0: i32) -> (i32, i32, i32, i32) {
    %c0_i32 = arith.constant 0 : i32
    %c0_i32_0 = arith.constant 0 : i32
    %c0_i32_1 = arith.constant 0 : i32
    %c0_i32_2 = arith.constant 0 : i32
    return %arg0, %c0_i32, %c0_i32_0, %c0_i32_1 : i32, i32, i32, i32
  }
}

</mosaic_0001>

<bundles_post_ra>
// kernel: tpu_custom_call.1
= control target key start
LH: loop header
LB: loop body
LE: loop exit
PB: predicated region body
PF: predicated region fallthrough
CT: control target
= control target key end

     0   :  { %s1689_s0 = inlined_call_operand.hbm [shape: bf16[32,64], index: 0, kind: input, shape index: {}]   ;;  %s1690_s1 = inlined_call_operand.hbm [shape: bf16[32,32], index: 1, kind: input, shape index: {}]   ;;  %s1691_s2 = inlined_call_operand.hbm [shape: bf16[64,128], index: 2, kind: input, shape index: {}]   ;;  %s1692_s3 = inlined_call_operand.vmem [shape: f32[1,128], index: 3, kind: input, shape index: {}]   ;;  %s1693_s4 = inlined_call_operand.hbm [shape: bf16[32,128], index: 4, kind: input, shape index: {}]   ;;  %s1694_s5 = inlined_call_operand.vmem [shape: f32[1,128], index: 5, kind: input, shape index: {}]   ;;  %s1695_s6 = inlined_call_operand.vmem [shape: f32[2,128], index: 6, kind: input, shape index: {}]   ;;  %s1696_s7 = inlined_call_operand.vmem [shape: f32[2], index: 7, kind: input, shape index: {}]   ;;  %s1697_s8 = inlined_call_operand.hbm [shape: f32[4,2,8,8], index: 8, kind: output, shape index: {}]  }
   0x1   :  { %1708 = sst [smem:[#allocation22_spill]] %s1689_s0 }
   0x2   :  { %1709 = sst [smem:[#allocation23_spill]] %s1691_s2 }
   0x3   :  { %1710 = sst [smem:[#allocation24_spill]] %s1693_s4 }
   0x4   :  { %1711 = sst [smem:[#allocation25_spill]] %s1696_s7 }
   0x5   :  { %13 = vsyncpa [#allocation3], 0 }
   0x6   :  { %15 = vsyncpa [#allocation3 + $0x1], 0 }
   0x7   :  { %16 = vsyncpa [#allocation7], 0 }
   0x8   :  { %18 = vsyncpa [#allocation7 + $0x1], 0 }
   0x9   :  { %19 = vsyncpa [#allocation10], 0 }
   0xa   :  { %20 = vsyncpa [#allocation5], 0 }
   0xb   :  { %21 = vsyncpa [#allocation4], 0 }
   0xc   :  { %23 = vsyncpa [#allocation4 + $0x1], 0  ;;  %s1382_s27 = smov 0   ;;  %s1384_s28 = smov 0  }
   0xd   :  { %s1386_s29 = smov 0   ;;  %s1388_s30 = smov 0  }
   0xe LB: > { %1712 = sst [smem:[#allocation19_spill]] %s1319_s29  ;;  %s1403_s9 = sadd.s32 4294967295, %s1323_s30   ;;  %s1323_s30 = sphi %s1388_s30, %s1737_s30   ;;  %s1319_s29 = sphi %s1386_s29, %s1739_s29   ;;  %s1315_s28 = sphi %s1384_s28, %s1741_s28   ;;  %s1311_s27 = sphi %s1382_s27, %s1740_s27  }
   0xf   : > { %s918_s10 = sadd.s32 4294967294, %s1323_s30   ;;  %p49_p0 = scmp.ne.s32.totalorder %s1315_s28, %s1311_s27 }
  0x10   : > { %p1703_p1 = scmp.eq.s32.totalorder %s1403_s9, 0  ;;  %p225_p2 = scmp.eq.s32.totalorder %s1403_s9, 1 }
  0x11   : > { %p231_p3 = scmp.eq.s32.totalorder %s918_s10, 1  ;;  %p919_p5 = scmp.ge.s32.totalorder %s1323_s30, 1 }
  0x12   : > { %p1412_p4 = por %p1703_p1, %p49_p0  ;;  %p238_p7 = scmp.lt.s32.totalorder %s1323_s30, 3 }
  0x13   : > { %p1417_p6 = por %p231_p3, %p49_p0  ;;  %s1325_s14 = smov [#allocation8]  }
  0x14   : > { %s1713_s11 = scalar_select %p1412_p4, 1, 0 }
  0x15   : > { %s1714_s12 = scalar_select %p1417_p6, 1, 0 }
  0x16   : > { %p1422_p8 = pnand %p919_p5, %p238_p7  ;;  %s250_s15 = sshll.u32 %s1325_s14, 4  ;;  %s251_s15 = int_to_ptr.vmem [resolvable:$true] %s250_s15 }
  0x17   : > { %s1326_s17 = smov [#allocation9]   ;;  %s1717_s7 = sld [smem:[#allocation25_spill]] }
  0x18   : > { %p1042_p9 = pneg %p1422_p8  ;;  %s266_s18 = sshll.u32 %s1326_s17, 4  ;;  %s267_s18 = int_to_ptr.vmem [resolvable:$true] %s266_s18 }
  0x19   : > { %s1131_s22 = scalar_lea.vmem %s251_s15, 512  ;;  %p1139_p5 = scmp.lt.s32.totalorder %s251_s15, %s251_s15 }
  0x1a   : > { %p1431_p11 = pnand %p1042_p9, %p1703_p1  ;;  %p1132_p13 = scmp.ne.s32.totalorder %s251_s15, %s1131_s22 }
  0x1b   : > { %p1140_p7 = scmp.lt.s32.totalorder %s1131_s22, %s1131_s22 }
  0x1c   : > { %p1122_p12 = pneg %p1431_p11 }
  0x1d   : > { %s286_s21 = sshll.u32 %s1717_s7, 4  ;;  %p1141_p9 = por %p1140_p7, %p1139_p5  ;;  %s1438_s21 = int_to_ptr.vmem [resolvable:$true] %s286_s21 }
  0x1e   : > { %p1134_p0 = pnand %p1132_p13, %p1122_p12 }
  0x20   : > { %p1135_p3 = pneg %p1134_p0 }
  0x22   : > { %p1142_p10 = pnand %p1141_p9, %p1135_p3 }
  0x24   : > { %1145 = shalt.err (!%p1142_p10)
}
  0x25   : > { %s1698_s23 = smov 64   ;;  %s1700_s24 = smov 4  }
  0x26   : > { %s1718_s2 = sld [smem:[#allocation23_spill]]  ;;  %s1157_s10 = scalar_lea.vmem %s267_s18, 256 }
  0x27   : > { %p1158_p13 = scmp.ne.s32.totalorder %s267_s18, %s1157_s10  ;;  %p1165_p3 = scmp.lt.s32.totalorder %s267_s18, %s267_s18 }
  0x28   : > { %p1166_p10 = scmp.lt.s32.totalorder %s1157_s10, %s1157_s10 }
  0x29   : > { %p1160_p0 = pnand %p1158_p13, %p1122_p12 }
  0x2a   : > { %p1167_p7 = por %p1166_p10, %p1165_p3 }
  0x2b   : > { %p1161_p5 = pneg %p1160_p0 }
  0x2c   : > { %1045 = dma.hbm_to_vmem [thread:$0]  (!%p1431_p11), %s1718_s2, 512, %s251_s15, [#allocation7], %s1698_s23, %s1698_s23, %s1700_s24  }
  0x2d   : > { %p1168_p9 = pnand %p1167_p7, %p1161_p5 }
  0x2f   : > { %1171 = shalt.err (!%p1168_p9)
}
  0x30   : > { %s1719_s4 = sld [smem:[#allocation24_spill]]  ;;  %s1172_s15 = scalar_lea.vmem %s1438_s21, 16 }
  0x31   : > { %p1173_p13 = scmp.ne.s32.totalorder %s1438_s21, %s1172_s15  ;;  %p1180_p3 = scmp.lt.s32.totalorder %s1438_s21, %s1438_s21 }
  0x32   : > { %p1181_p10 = scmp.lt.s32.totalorder %s1172_s15, %s1172_s15 }
  0x33   : > { %p1175_p0 = pnand %p1173_p13, %p1122_p12 }
  0x34   : > { %p1182_p7 = por %p1181_p10, %p1180_p3 }
  0x35   : > { %p1176_p5 = pneg %p1175_p0 }
  0x36   : > { %1048 = dma.hbm_to_vmem [thread:$0]  (!%p1431_p11), %s1719_s4, 256, %s267_s18, [#allocation10], %s1698_s23, %s1698_s23, %s1700_s24  }
  0x37   : > { %p1183_p9 = pnand %p1182_p7, %p1176_p5 }
  0x39   : > { %1186 = shalt.err (!%p1183_p9)
}
  0x3a   : > { %s1329_s19 = smov [#allocation11]   ;;  %s1475_s18 = sadd.s32 1, %s1323_s30  }
  0x3b   : > { %1051 = dma.vmem_to_smem (!%p1431_p11), %s1438_s21, 16, %s1329_s19, [#allocation5]  }
  0x3c   : > { %1720 = sst [smem:[#allocation20_spill]] %s1475_s18  ;;  %s33_s20 = ssub.s32 %s1323_s30, %s1475_s18 }
  0x3d   : > { %s36_s22 = sadd.s32 1, %s1319_s29  ;;  %p34_p12 = scmp.eq.s32.totalorder %s33_s20, 0 }
  0x3e   : > { %p43_p13 = scmp.ne.s32.totalorder %s1319_s29, %s1315_s28  ;;  %p44_p0 = scmp.eq.s32.totalorder %s1323_s30, 0 }
  0x3f   : > { %p1066_p5 = scmp.lt.s32.totalorder %s1323_s30, 2  ;;  %s297_s26 = sand.u32 1, %s1319_s29  }
  0x40   : > { %s1485_s16 = scalar_select %p34_p12, %s1319_s29, %s36_s22  }
  0x41   : > { %p45_p3 = por %p44_p0, %p43_p13  ;;  %p1489_p10 = por %p225_p2, %p43_p13 }
  0x42   : > { %1721 = sst [smem:[#allocation21_spill]] %s1485_s16  ;;  %s960_s10 = sshll.u32 %s1323_s30, 7 }
  0x43   : > { %s1722_s25 = scalar_select %p1489_p10, 1, 0 }
  0x44   : > { %s1495_s21 = sshll.u32 %s297_s26, 3  ;;  %s1723_s0 = sld [smem:[#allocation22_spill]] }
  0x45   : > { %s301_s19 = scalar_lea.vmem [#allocation2], %s1495_s21  ;;  %p1503_p11 = pnand %p1066_p5, %p45_p3 }
  0x46   : > { %s308_s20 = sshll.u32 %s301_s19, 4  ;;  %s1512_s14 = scalar_lea.hbm %s1690_s1, %s960_s10  ;;  %s1507_s20 = int_to_ptr.vmem [resolvable:$true] %s308_s20 }
  0x47   : > { %s1514_s17 = scalar_lea.sflag [#allocation3], %s297_s26  ;;  %p1189_p7 = pneg %p1503_p11 }
  0x4a   : > { %s1500_s15 = scalar_lea.hbm %s1723_s0, %s960_s10  ;;  %s1192_s7 = scalar_lea.hbm %s1723_s0, 256 }
  0x4b   : > { %s1187_s2 = scalar_lea.hbm %s1500_s15, 128  ;;  %p1193_p13 = scmp.lt.s32.totalorder %s1500_s15, %s1723_s0 }
  0x4c   : > { %p1188_p2 = scmp.ne.s32.totalorder %s1500_s15, %s1187_s2  ;;  %p1194_p0 = scmp.lt.s32.totalorder %s1192_s7, %s1187_s2 }
  0x4e   : > { %p1190_p9 = pnand %p1189_p7, %p1188_p2  ;;  %p1195_p5 = por %p1194_p0, %p1193_p13 }
  0x50   : > { %p1191_p12 = pneg %p1190_p9 }
  0x52   : > { %p1196_p3 = pnand %p1195_p5, %p1191_p12 }
  0x54   : > { %1199 = shalt.err (!%p1196_p3)
}
  0x55   : > { %s1200_s23 = scalar_lea.vmem %s1507_s20, 128  ;;  %s1330_s4 = smov [#allocation2]  }
  0x56   : > { %p1201_p1 = scmp.ne.s32.totalorder %s1507_s20, %s1200_s23  ;;  %s1205_s24 = sshll.u32 %s1330_s4, 4  ;;  %s1206_s24 = int_to_ptr.vmem [resolvable:$false] %s1205_s24 }
  0x57   : > { %s1207_s26 = scalar_lea.vmem %s1206_s24, 256  ;;  %p1208_p6 = scmp.lt.s32.totalorder %s1507_s20, %s1206_s24 }
  0x58   : > { %p1203_p2 = pnand %p1201_p1, %p1189_p7  ;;  %p1209_p10 = scmp.lt.s32.totalorder %s1207_s26, %s1200_s23 }
  0x5a   : > { %p1204_p9 = pneg %p1203_p2  ;;  %p1210_p4 = por %p1209_p10, %p1208_p6 }
  0x5c   : > { %p1211_p13 = pnand %p1210_p4, %p1204_p9 }
  0x5e   : > { %1214 = shalt.err (!%p1211_p13)
}
  0x5f   : > { %s1725_s2 = smov 4   ;;  %s1726_s7 = smov 64  }
  0x60   : > { %1055 = dma.hbm_to_vmem [thread:$0]  (!%p1503_p11), %s1500_s15, 128, %s1507_s20, %s1514_s17, %s1726_s7, %s1726_s7, %s1725_s2  }
  0x61   : > { %s322_s29 = scalar_lea.vmem [#allocation6], %s1495_s21  ;;  %s318_s10 = sand.u32 1, %s1323_s30  }
  0x62   : > { %s329_s16 = sshll.u32 %s322_s29, 4  ;;  %s319_s19 = scalar_lea.sflag [#allocation7], %s318_s10  ;;  %s1546_s16 = int_to_ptr.vmem [resolvable:$true] %s329_s16 }
  0x63   : > { %s1215_s23 = scalar_lea.hbm %s1512_s14, 128  ;;  %s1220_s26 = scalar_lea.hbm %s1690_s1, 256 }
  0x64   : > { %p1216_p1 = scmp.ne.s32.totalorder %s1512_s14, %s1215_s23  ;;  %p1221_p10 = scmp.lt.s32.totalorder %s1512_s14, %s1690_s1 }
  0x65   : > { %p1222_p12 = scmp.lt.s32.totalorder %s1220_s26, %s1215_s23 }
  0x66   : > { %p1218_p4 = pnand %p1216_p1, %p1189_p7 }
  0x67   : > { %p1223_p0 = por %p1222_p12, %p1221_p10 }
  0x68   : > { %p1219_p6 = pneg %p1218_p4 }
  0x6a   : > { %p1224_p5 = pnand %p1223_p0, %p1219_p6 }
  0x6c   : > { %1227 = shalt.err (!%p1224_p5)
}
  0x6d   : > { %s1228_s21 = scalar_lea.vmem %s1546_s16, 128  ;;  %s1331_s15 = smov [#allocation6]  }
  0x6e   : > { %p1229_p3 = scmp.ne.s32.totalorder %s1546_s16, %s1228_s21  ;;  %s1233_s20 = sshll.u32 %s1331_s15, 4  ;;  %s1234_s20 = int_to_ptr.vmem [resolvable:$false] %s1233_s20 }
  0x6f   : > { %s1235_s17 = scalar_lea.vmem %s1234_s20, 256  ;;  %p1236_p13 = scmp.lt.s32.totalorder %s1546_s16, %s1234_s20 }
  0x70   : > { %p1231_p2 = pnand %p1229_p3, %p1189_p7  ;;  %p1237_p1 = scmp.lt.s32.totalorder %s1235_s17, %s1228_s21 }
  0x72   : > { %p1232_p9 = pneg %p1231_p2  ;;  %p1238_p4 = por %p1237_p1, %p1236_p13 }
  0x74   : > { %p1239_p10 = pnand %p1238_p4, %p1232_p9 }
  0x76   : > { %1242 = shalt.err (!%p1239_p10)
}
  0x77   : > { %1058 = dma.hbm_to_vmem [thread:$0]  (!%p1503_p11), %s1512_s14, 128, %s1546_s16, %s319_s19, %s1726_s7, %s1726_s7, %s1725_s2  }
  0x78   : > { %341 = sbr.rel (%p1422_p8) target bundleno = 582 (0x246), region = 52  ;;  %s1576_s0 = sand.u32 (!%p1422_p8), 1, %s1315_s28  }
  0x79   : > { %s931_s18 = sshll.u32 (!%p1422_p8), %s1576_s0, 3  ;;  %s344_s29 = scalar_lea.sflag (!%p1422_p8), [#allocation3], %s1576_s0 }
  0x7a   : > { %s1580_s10 = scalar_lea.vmem (!%p1422_p8), [#allocation2], %s931_s18  ;;  %p1727_p7 = scmp.ne.s32.totalorder (!%p1422_p8), %s1713_s11, 0 }
  0x7d   : > { %1286 = dma.done.wait (%p1727_p7), %s344_s29, 128  }
  0x7e   : > { %1288 = vsyncadd (%p1727_p7), %s344_s29, 4294967168  ;;  %s352_s22 = sand.u32 1, %s1403_s9   ;;  %s356_s14 = scalar_lea.vmem [#allocation6], %s931_s18 }
  0x7f   : > { %s353_s13 = scalar_lea.sflag [#allocation7], %s352_s22 }
  0x80   : > { %1290 = dma.done.wait (%p1727_p7), %s353_s13, 128  }
  0x81   : > { %1292 = vsyncadd (%p1727_p7), %s353_s13, 4294967168  ;;  %p1728_p8 = scmp.eq.s32.totalorder %s1403_s9, 0 }
  0x83   : > { %1294 = dma.done.wait (%p1728_p8), [#allocation7], 512   ;;  %p1729_p11 = pmov %p1728_p8 }
  0x84   : > { %p1730_p6 = pmov %p1728_p8 }
  0x85   : > { %1296 = vsyncadd (%p1729_p11), [#allocation7], 4294966784 }
  0x86   : > { %1298 = dma.done.wait (%p1730_p6), [#allocation10], 256   ;;  %p1731_p12 = pmov %p1730_p6 }
  0x87   : > { %p1732_p0 = pmov %p1730_p6 }
  0x88   : > { %1300 = vsyncadd (%p1731_p12), [#allocation10], 4294967040 }
  0x89   : > { %1302 = dma.done.wait (%p1732_p0), [#allocation5], 16   ;;  %p1733_p5 = pmov %p1732_p0 }
  0x8b   : > { %1304 = vsyncadd (%p1733_p5), [#allocation5], 4294967280 }
  0x8c   : > { %373 = sfence }
  0x8d   : > { %v1112_v0 = vld [vmem:[#allocation8 + $0x18] sm:$0xff]   ;;  %v1332_v1 = vmov 0.0   ;;  %v1113_v2 = vld [vmem:[#allocation8 + $0x10] sm:$0xff]   ;;  %vm1333_vm0 = vmmov 0   ;;  %v1115_v3 = vld [vmem:[#allocation9 + $0x8] sm:$0xff]   ;;  %vm534_vm1 = vcmask 261120   ;;  %v583_v9 = vlaneseq }
  0x8e   : > { %980 = vmatprep.subr.bf16.mxu0 %v1332_v1  ;;  %992 = vmatprep.subr.bf16.mxu1 %v1332_v1  ;;  %v1117_v4 = vld [vmem:[#allocation9] sm:$0xff]   ;;  %v1114_v5 = vld [vmem:[#allocation8 + $0x8] sm:$0xff]   ;;  %v1119_v6 = vld [vmem:[%s356_s14] sm:$0xff]   ;;  %vm457_vm2 = vcmask 523264   ;;  %s589_s4 = sld [smem:[#allocation11]]  ;;  %s936_s26 = sshll.u32 %s1576_s0, 5 }
  0x8f   : > { %981 = vmatpush3.bf16.msra.mxu0 %v1112_v0  ;;  %988 = vmatprep.mubr.msk.bf16.mxu0 %vm1333_vm0, %v1332_v1  ;;  %v1116_v7 = vld [vmem:[#allocation8] sm:$0xff]   ;;  %v584_v10 = vshrl.u32 %v583_v9, 7  ;;  %s949_s24 = sld [smem:[#allocation11 + $0x1]]  ;;  %vm631_vm3 = vcmask 64512   ;;  %s406_s21 = scalar_lea.vmem [#allocation12], %s936_s26 }
  0x90   : > { %982 = vmatprep.subr.bf16.mxu0 %v1332_v1  ;;  %996 = vmatprep.mubr.msk.bf16.mxu1 %vm1333_vm0, %v1332_v1  ;;  %v1118_v8 = vld [vmem:[%s1580_s10] sm:$0xff]   ;;  %s791_s15 = sshll.u32 %s406_s21, 4  ;;  %s963_s20 = sshll.u32 %s1403_s9, 9  ;;  %s1639_s15 = int_to_ptr.vmem [resolvable:$true] %s791_s15 }
  0x91   : > { %993 = vmatpush3.bf16.msra.mxu1 %v1115_v3  ;;  %v944_v11 = vld [vmem:[%s1694_s5] ss:$0 sm:$0xff]  ;;  %v585_v16 = vsub.s32 0, %v584_v10  ;;  %v635_v17 = vsub.s32 1, %v584_v10  ;;  %s1644_s29 = scalar_lea.hbm %s1697_s8, %s963_s20  ;;  %s777_s9 = scalar_lea.sflag [#allocation4], %s1576_s0 }
  0x92   : > { %994 = vmatprep.subr.bf16.mxu1 %v1332_v1  ;;  %v937_v14 = vld [vmem:[%s1692_s3] ss:$0 sm:$0xff]  ;;  %s1243_s10 = scalar_lea.vmem %s1639_s15, 512  ;;  %p1734_p2 = scmp.ne.s32.totalorder %s1722_s25, 0 }
  0x93   : > { %983 = vmatpush3.bf16.msra.mxu0 %v1113_v2  ;;  %v581_v18 = vld [vmem:[%s1695_s6] sm:$0x3]  ;;  %p1244_p3 = scmp.ne.s32.totalorder %s1639_s15, %s1243_s10  ;;  %s1334_s22 = smov [#allocation12]  }
  0x94   : > { %984 = vmatprep.subr.bf16.mxu0 %v1332_v1  ;;  %v586_v24 = vrot.slane %v581_v18, %v585_v16  ;;  %v636_v25 = vrot.slane %v581_v18, %v635_v17  ;;  %v590_v44 = vstv %s589_s4  ;;  %s1247_s13 = sshll.u32 %s1334_s22, 4  ;;  %s1248_s13 = int_to_ptr.vmem [resolvable:$false] %s1247_s13 }
  0x95   : > { %995 = vmatpush3.bf16.msra.mxu1 %v1117_v4  ;;  %v640_v45 = vstv %s949_s24  ;;  %p1245_p9 = pnand %p1244_p3, %p1734_p2  ;;  %s1249_s14 = scalar_lea.vmem %s1248_s13, 1024 }
  0x96   : > { %1000 = vmatprep.subr.bf16.mxu1 %v1332_v1  ;;  %p1250_p1 = scmp.lt.s32.totalorder %s1639_s15, %s1248_s13  ;;  %p1251_p4 = scmp.lt.s32.totalorder %s1249_s14, %s1243_s10 }
  0x97   : > { %985 = vmatpush3.bf16.msra.mxu0 %v1114_v5  ;;  %p1246_p13 = pneg %p1245_p9 }
  0x98   : > { %986 = vmatprep.subr.bf16.mxu0 %v1332_v1  ;;  %997 = vmatmul.mubr.msk.bf16.vlgmr.msra.gmra.mxu1 %vm534_vm1, %v1119_v6  ;;  %p1252_p10 = por %p1251_p4, %p1250_p1 }
  0x99   : > { %1002 = vmatprep.mubr.msk.bf16.mxu1 %vm1333_vm0, %v1332_v1 }
  0x9a   : > { %p1253_p7 = pnand %p1252_p10, %p1246_p13 }
  0x9b   : > { %987 = vmatpush3.bf16.msra.mxu0 %v1116_v7 }
  0x9c   : > { %1006 = vmatprep.subr.bf16.mxu0 %v1332_v1 }
  0x9e   : > { %989 = vmatmul.mubr.msk.bf16.vlgmr.msra.gmra.mxu0 %vm457_vm2, %v1118_v8 }
  0x9f   : > { %1008 = vmatprep.mubr.msk.bf16.mxu0 %vm1333_vm0, %v1332_v1 }
 0x158   : > { %v572_v12 = vpop.f32.mrf.mxu1 }
 0x159   : > { %v573_v15 = vadd.f32 %v944_v11, %v572_v12 }
 0x15a   : > { %v998_v13 = vpop.f32.mrf.mxu1 }
 0x15b   : > { %v579_v23 = vmax.f32 %v573_v15, 0.0 }
 0x15c   : > { %v575_v19 = vpop.f32.mrf.mxu1 }
 0x15d   : > { %v587_v31 = vmul.f32 %v586_v24, %v579_v23  ;;  %v637_v32 = vmul.f32 %v636_v25, %v579_v23  ;;  %v576_v34 = vadd.f32 %v944_v11, %v575_v19 }
 0x15e   : > { %v495_v20 = vpop.f32.mrf.mxu0  ;;  %v999_v22 = vpop.f32.mrf.mxu1 }
 0x15f   : > { %v496_v21 = vadd.f32 %v937_v14, %v495_v20  ;;  %v588_v36 = vpack.c.bf16 %v587_v31, %v587_v31  ;;  %v638_v37 = vpack.c.bf16 %v637_v32, %v637_v32  ;;  %v580_v38 = vmax.f32 %v576_v34, 0.0 }
 0x160   : > { %v990_v26 = vpop.f32.mrf.mxu0 }
 0x161   : > { %v502_v27 = vmax.f32 %v496_v21, 0.0  ;;  %v684_v40 = vmul.f32 %v586_v24, %v580_v38  ;;  %v730_v41 = vmul.f32 %v636_v25, %v580_v38 }
 0x162   : > { %v498_v28 = vpop.f32.mrf.mxu0 }
 0x163   : > { %v582_v29 = vpack.c.bf16 %v502_v27, %v502_v27  ;;  %v499_v30 = vadd.f32 %v937_v14, %v498_v28  ;;  %v685_v42 = vpack.c.bf16 %v684_v40, %v684_v40  ;;  %v731_v43 = vpack.c.bf16 %v730_v41, %v730_v41 }
 0x164   : > { %v991_v33 = vpop.f32.mrf.mxu0 }
 0x165   : > { %1001 = vmatpush3.bf16.xpose.msra.mxu1 %v582_v29  ;;  %1007 = vmatpush3.bf16.xpose.msra.mxu0 %v582_v29  ;;  %v503_v35 = vmax.f32 %v499_v30, 0.0 }
 0x166   : > { %1012 = vmatprep.subr.bf16.mxu1 %v1332_v1  ;;  %1018 = vmatprep.subr.bf16.mxu0 %v1332_v1 }
 0x167   : > { %v683_v39 = vpack.c.bf16 %v503_v35, %v503_v35 }
 0x16c   : > { %1003 = vmatmul.mubr.bf16.vlgmr.msra.gmra.mxu1 %v588_v36  ;;  %1009 = vmatmul.mubr.bf16.vlgmr.msra.gmra.mxu0 %v638_v37 }
 0x16d   : > { %1013 = vmatpush3.bf16.xpose.msra.mxu1 %v683_v39  ;;  %1019 = vmatpush3.bf16.xpose.msra.mxu0 %v683_v39 }
 0x16e   : > { %1014 = vmatprep.mubr.msk.bf16.mxu1 %vm1333_vm0, %v1332_v1  ;;  %1020 = vmatprep.mubr.msk.bf16.mxu0 %vm1333_vm0, %v1332_v1 }
 0x174   : > { %1015 = vmatmul.mubr.bf16.vlgmr.msra.gmra.mxu1 %v685_v42  ;;  %1021 = vmatmul.mubr.bf16.vlgmr.msra.gmra.mxu0 %v731_v43 }
 0x22c   : > { %v625_v46 = vpop.f32.mrf.mxu1  ;;  %v675_v47 = vpop.f32.mrf.mxu0 }
 0x22d   : > { %v626_v48 = vadd.f32 %v625_v46, %v590_v44  ;;  %v676_v49 = vadd.f32 %v675_v47, %v640_v45 }
 0x22e   : > { %v1004_v50 = vpop.f32.mrf.mxu1  ;;  %v1010_v51 = vpop.f32.mrf.mxu0 }
 0x22f   : > { %632 = vst.msk [vmem:[%s406_s21] sm:$0xff] %vm631_vm3, %v626_v48  ;;  %950 = vst.msk [vmem:[%s406_s21 + $0x8] sm:$0xff] %vm631_vm3, %v676_v49 }
 0x230   : > { %v628_v52 = vpop.f32.mrf.mxu1  ;;  %v678_v53 = vpop.f32.mrf.mxu0 }
 0x232   : > { %v1005_v54 = vpop.f32.mrf.mxu1  ;;  %v1011_v55 = vpop.f32.mrf.mxu0 }
 0x234   : > { %v722_v56 = vpop.f32.mrf.mxu1  ;;  %v768_v57 = vpop.f32.mrf.mxu0 }
 0x235   : > { %v723_v58 = vadd.f32 %v722_v56, %v590_v44  ;;  %v769_v59 = vadd.f32 %v768_v57, %v640_v45 }
 0x236   : > { %v1016_v60 = vpop.f32.mrf.mxu1  ;;  %v1022_v61 = vpop.f32.mrf.mxu0 }
 0x237   : > { %951 = vst.msk [vmem:[%s406_s21 + $0x10] sm:$0xff] %vm631_vm3, %v723_v58  ;;  %953 = vst.msk [vmem:[%s406_s21 + $0x18] sm:$0xff] %vm631_vm3, %v769_v59 }
 0x238   : > { %v725_v62 = vpop.f32.mrf.mxu1  ;;  %v771_v63 = vpop.f32.mrf.mxu0 }
 0x239   : > { %1256 = shalt.err (!%p1253_p7)
}
 0x23a   : > { %s1257_s11 = scalar_lea.hbm %s1644_s29, 512  ;;  %s1261_s16 = scalar_lea.hbm %s1697_s8, 1024 }
 0x23b   : > { %p1258_p8 = scmp.ne.s32.totalorder %s1644_s29, %s1257_s11  ;;  %p1262_p12 = scmp.lt.s32.totalorder %s1644_s29, %s1697_s8 }
 0x23c   : > { %p1263_p0 = scmp.lt.s32.totalorder %s1261_s16, %s1257_s11 }
 0x23d   : > { %p1259_p11 = pnand %p1258_p8, %p1734_p2 }
 0x23e   : > { %p1264_p5 = por %p1263_p0, %p1262_p12 }
 0x23f   : > { %p1260_p6 = pneg %p1259_p11 }
 0x241   : > { %p1265_p3 = pnand %p1264_p5, %p1260_p6 }
 0x243   : > { %1268 = shalt.err (!%p1265_p3)
}
 0x244   : > { %s1335_s4 = smov 128   ;;  %s1336_s24 = smov 8   ;;  %v1017_v0 = vpop.f32.mrf.mxu1  ;;  %v1023_v1 = vpop.f32.mrf.mxu0 }
 0x245   : > { %1040 = dma.vmem_to_hbm [thread:$0]  (%p1734_p2), %s1639_s15, 512, %s1644_s29, %s777_s9, %s1335_s4, %s1335_s4, %s1336_s24  }
 0x246 PF: > { %s806_s26 = sand.u32 1, %s1311_s27   ;;  %p1735_p9 = scmp.ne.s32.totalorder %s1714_s12, 0 }
 0x247   : > { %p1736_p13 = scmp.ge.s32.totalorder %s1323_s30, 2  ;;  %s807_s21 = scalar_lea.sflag [#allocation4], %s806_s26 }
 0x249   : > { %p1060_p1 = pnand %p1736_p13, %p1735_p9 }
 0x24b   : > { %p1061_p4 = pneg %p1060_p1 }
 0x24d   : > { %1306 = dma.done.wait (%p1061_p4), %s807_s21, 512  }
 0x24e   : > { %1308 = vsyncadd (%p1061_p4), %s807_s21, 4294966784  ;;  %s1737_s30 = sld [smem:[#allocation20_spill]]  ;;  %s1740_s27 = smov %s1315_s28 }
 0x24f   : > { %s1738_s20 = sld [smem:[#allocation19_spill]] }
 0x250   : > { %s1739_s29 = sld [smem:[#allocation21_spill]] }
 0x254   : > { %p26_p2 = scmp.ge.s32.totalorder %s1737_s30, 4  }
 0x255   : > { %s1741_s28 = smov %s1738_s20 }
 0x256   :  { %28 = sbr.rel (!%p26_p2) target bundleno = 14 (0xe), region = 126 }
 0x25b   :  { %812 = vsyncpa [#allocation3], 1 }
 0x25c   :  { %814 = vsyncpa [#allocation3 + $0x1], 1 }
 0x25d   :  { %815 = vsyncpa [#allocation7], 1 }
 0x25e   :  { %817 = vsyncpa [#allocation7 + $0x1], 1 }
 0x25f   :  { %818 = vsyncpa [#allocation10], 1 }
 0x260   :  { %819 = vsyncpa [#allocation4], 1 }
 0x261   :  { %821 = vsyncpa [#allocation4 + $0x1], 1 }
 0x262   :  { %822 = vsyncpa [#allocation5], 1 }
 0x263   :  { %824 = vsyncpa [#allocation5 + $0x1], 1 }

// kernel: tpu_custom_call.1
= control target key start
LH: loop header
LB: loop body
LE: loop exit
PB: predicated region body
PF: predicated region fallthrough
CT: control target
= control target key end

     0   :  { %s1689_s0 = inlined_call_operand.hbm [shape: bf16[32,64], index: 0, kind: input, shape index: {}]   ;;  %s1690_s1 = inlined_call_operand.hbm [shape: bf16[32,32], index: 1, kind: input, shape index: {}]   ;;  %s1691_s2 = inlined_call_operand.hbm [shape: bf16[64,128], index: 2, kind: input, shape index: {}]   ;;  %s1692_s3 = inlined_call_operand.vmem [shape: f32[1,128], index: 3, kind: input, shape index: {}]   ;;  %s1693_s4 = inlined_call_operand.hbm [shape: bf16[32,128], index: 4, kind: input, shape index: {}]   ;;  %s1694_s5 = inlined_call_operand.vmem [shape: f32[1,128], index: 5, kind: input, shape index: {}]   ;;  %s1695_s6 = inlined_call_operand.vmem [shape: f32[2,128], index: 6, kind: input, shape index: {}]   ;;  %s1696_s7 = inlined_call_operand.vmem [shape: f32[2], index: 7, kind: input, shape index: {}]   ;;  %s1697_s8 = inlined_call_operand.hbm [shape: f32[4,2,8,8], index: 8, kind: output, shape index: {}]  }
   0x1   :  { %1708 = sst [smem:[#allocation22_spill]] %s1689_s0 }
   0x2   :  { %1709 = sst [smem:[#allocation23_spill]] %s1691_s2 }
   0x3   :  { %1710 = sst [smem:[#allocation24_spill]] %s1693_s4 }
   0x4   :  { %1711 = sst [smem:[#allocation25_spill]] %s1696_s7 }
   0x5   :  { %13 = vsyncpa [#allocation3], 0 }
   0x6   :  { %15 = vsyncpa [#allocation3 + $0x1], 0 }
   0x7   :  { %16 = vsyncpa [#allocation7], 0 }
   0x8   :  { %18 = vsyncpa [#allocation7 + $0x1], 0 }
   0x9   :  { %19 = vsyncpa [#allocation10], 0 }
   0xa   :  { %20 = vsyncpa [#allocation5], 0 }
   0xb   :  { %21 = vsyncpa [#allocation4], 0 }
   0xc   :  { %23 = vsyncpa [#allocation4 + $0x1], 0  ;;  %s1382_s27 = smov 0   ;;  %s1384_s28 = smov 0  }
   0xd   :  { %s1386_s29 = smov 0   ;;  %s1388_s30 = smov 0  }
   0xe LB: > { %1712 = sst [smem:[#allocation19_spill]] %s1319_s29  ;;  %s1403_s9 = sadd.s32 4294967295, %s1323_s30   ;;  %s1323_s30 = sphi %s1388_s30, %s1737_s30   ;;  %s1319_s29 = sphi %s1386_s29, %s1739_s29   ;;  %s1315_s28 = sphi %s1384_s28, %s1741_s28   ;;  %s1311_s27 = sphi %s1382_s27, %s1740_s27  }
   0xf   : > { %s918_s10 = sadd.s32 4294967294, %s1323_s30   ;;  %p49_p0 = scmp.ne.s32.totalorder %s1315_s28, %s1311_s27 }
  0x10   : > { %p1703_p1 = scmp.eq.s32.totalorder %s1403_s9, 0  ;;  %p225_p2 = scmp.eq.s32.totalorder %s1403_s9, 1 }
  0x11   : > { %p231_p3 = scmp.eq.s32.totalorder %s918_s10, 1  ;;  %p919_p5 = scmp.ge.s32.totalorder %s1323_s30, 1 }
  0x12   : > { %p1412_p4 = por %p1703_p1, %p49_p0  ;;  %p238_p7 = scmp.lt.s32.totalorder %s1323_s30, 3 }
  0x13   : > { %p1417_p6 = por %p231_p3, %p49_p0  ;;  %s1325_s14 = smov [#allocation8]  }
  0x14   : > { %s1713_s11 = scalar_select %p1412_p4, 1, 0 }
  0x15   : > { %s1714_s12 = scalar_select %p1417_p6, 1, 0 }
  0x16   : > { %p1422_p8 = pnand %p919_p5, %p238_p7  ;;  %s250_s15 = sshll.u32 %s1325_s14, 4  ;;  %s251_s15 = int_to_ptr.vmem [resolvable:$true] %s250_s15 }
  0x17   : > { %s1326_s17 = smov [#allocation9]   ;;  %s1717_s7 = sld [smem:[#allocation25_spill]] }
  0x18   : > { %p1042_p9 = pneg %p1422_p8  ;;  %s266_s18 = sshll.u32 %s1326_s17, 4  ;;  %s267_s18 = int_to_ptr.vmem [resolvable:$true] %s266_s18 }
  0x19   : > { %s1131_s22 = scalar_lea.vmem %s251_s15, 512  ;;  %p1139_p5 = scmp.lt.s32.totalorder %s251_s15, %s251_s15 }
  0x1a   : > { %p1431_p11 = pnand %p1042_p9, %p1703_p1  ;;  %p1132_p13 = scmp.ne.s32.totalorder %s251_s15, %s1131_s22 }
  0x1b   : > { %p1140_p7 = scmp.lt.s32.totalorder %s1131_s22, %s1131_s22 }
  0x1c   : > { %p1122_p12 = pneg %p1431_p11 }
  0x1d   : > { %s286_s21 = sshll.u32 %s1717_s7, 4  ;;  %p1141_p9 = por %p1140_p7, %p1139_p5  ;;  %s1438_s21 = int_to_ptr.vmem [resolvable:$true] %s286_s21 }
  0x1e   : > { %p1134_p0 = pnand %p1132_p13, %p1122_p12 }
  0x20   : > { %p1135_p3 = pneg %p1134_p0 }
  0x22   : > { %p1142_p10 = pnand %p1141_p9, %p1135_p3 }
  0x24   : > { %1145 = shalt.err (!%p1142_p10)
}
  0x25   : > { %s1698_s23 = smov 64   ;;  %s1700_s24 = smov 4  }
  0x26   : > { %s1718_s2 = sld [smem:[#allocation23_spill]]  ;;  %s1157_s10 = scalar_lea.vmem %s267_s18, 256 }
  0x27   : > { %p1158_p13 = scmp.ne.s32.totalorder %s267_s18, %s1157_s10  ;;  %p1165_p3 = scmp.lt.s32.totalorder %s267_s18, %s267_s18 }
  0x28   : > { %p1166_p10 = scmp.lt.s32.totalorder %s1157_s10, %s1157_s10 }
  0x29   : > { %p1160_p0 = pnand %p1158_p13, %p1122_p12 }
  0x2a   : > { %p1167_p7 = por %p1166_p10, %p1165_p3 }
  0x2b   : > { %p1161_p5 = pneg %p1160_p0 }
  0x2c   : > { %1045 = dma.hbm_to_vmem [thread:$0]  (!%p1431_p11), %s1718_s2, 512, %s251_s15, [#allocation7], %s1698_s23, %s1698_s23, %s1700_s24  }
  0x2d   : > { %p1168_p9 = pnand %p1167_p7, %p1161_p5 }
  0x2f   : > { %1171 = shalt.err (!%p1168_p9)
}
  0x30   : > { %s1719_s4 = sld [smem:[#allocation24_spill]]  ;;  %s1172_s15 = scalar_lea.vmem %s1438_s21, 16 }
  0x31   : > { %p1173_p13 = scmp.ne.s32.totalorder %s1438_s21, %s1172_s15  ;;  %p1180_p3 = scmp.lt.s32.totalorder %s1438_s21, %s1438_s21 }
  0x32   : > { %p1181_p10 = scmp.lt.s32.totalorder %s1172_s15, %s1172_s15 }
  0x33   : > { %p1175_p0 = pnand %p1173_p13, %p1122_p12 }
  0x34   : > { %p1182_p7 = por %p1181_p10, %p1180_p3 }
  0x35   : > { %p1176_p5 = pneg %p1175_p0 }
  0x36   : > { %1048 = dma.hbm_to_vmem [thread:$0]  (!%p1431_p11), %s1719_s4, 256, %s267_s18, [#allocation10], %s1698_s23, %s1698_s23, %s1700_s24  }
  0x37   : > { %p1183_p9 = pnand %p1182_p7, %p1176_p5 }
  0x39   : > { %1186 = shalt.err (!%p1183_p9)
}
  0x3a   : > { %s1329_s19 = smov [#allocation11]   ;;  %s1475_s18 = sadd.s32 1, %s1323_s30  }
  0x3b   : > { %1051 = dma.vmem_to_smem (!%p1431_p11), %s1438_s21, 16, %s1329_s19, [#allocation5]  }
  0x3c   : > { %1720 = sst [smem:[#allocation20_spill]] %s1475_s18  ;;  %s33_s20 = ssub.s32 %s1323_s30, %s1475_s18 }
  0x3d   : > { %s36_s22 = sadd.s32 1, %s1319_s29  ;;  %p34_p12 = scmp.eq.s32.totalorder %s33_s20, 0 }
  0x3e   : > { %p43_p13 = scmp.ne.s32.totalorder %s1319_s29, %s1315_s28  ;;  %p44_p0 = scmp.eq.s32.totalorder %s1323_s30, 0 }
  0x3f   : > { %p1066_p5 = scmp.lt.s32.totalorder %s1323_s30, 2  ;;  %s297_s26 = sand.u32 1, %s1319_s29  }
  0x40   : > { %s1485_s16 = scalar_select %p34_p12, %s1319_s29, %s36_s22  }
  0x41   : > { %p45_p3 = por %p44_p0, %p43_p13  ;;  %p1489_p10 = por %p225_p2, %p43_p13 }
  0x42   : > { %1721 = sst [smem:[#allocation21_spill]] %s1485_s16  ;;  %s960_s10 = sshll.u32 %s1323_s30, 7 }
  0x43   : > { %s1722_s25 = scalar_select %p1489_p10, 1, 0 }
  0x44   : > { %s1495_s21 = sshll.u32 %s297_s26, 3  ;;  %s1723_s0 = sld [smem:[#allocation22_spill]] }
  0x45   : > { %s301_s19 = scalar_lea.vmem [#allocation2], %s1495_s21  ;;  %p1503_p11 = pnand %p1066_p5, %p45_p3 }
  0x46   : > { %s308_s20 = sshll.u32 %s301_s19, 4  ;;  %s1512_s14 = scalar_lea.hbm %s1690_s1, %s960_s10  ;;  %s1507_s20 = int_to_ptr.vmem [resolvable:$true] %s308_s20 }
  0x47   : > { %s1514_s17 = scalar_lea.sflag [#allocation3], %s297_s26  ;;  %p1189_p7 = pneg %p1503_p11 }
  0x4a   : > { %s1500_s15 = scalar_lea.hbm %s1723_s0, %s960_s10  ;;  %s1192_s7 = scalar_lea.hbm %s1723_s0, 256 }
  0x4b   : > { %s1187_s2 = scalar_lea.hbm %s1500_s15, 128  ;;  %p1193_p13 = scmp.lt.s32.totalorder %s1500_s15, %s1723_s0 }
  0x4c   : > { %p1188_p2 = scmp.ne.s32.totalorder %s1500_s15, %s1187_s2  ;;  %p1194_p0 = scmp.lt.s32.totalorder %s1192_s7, %s1187_s2 }
  0x4e   : > { %p1190_p9 = pnand %p1189_p7, %p1188_p2  ;;  %p1195_p5 = por %p1194_p0, %p1193_p13 }
  0x50   : > { %p1191_p12 = pneg %p1190_p9 }
  0x52   : > { %p1196_p3 = pnand %p1195_p5, %p1191_p12 }
  0x54   : > { %1199 = shalt.err (!%p1196_p3)
}
  0x55   : > { %s1200_s23 = scalar_lea.vmem %s1507_s20, 128  ;;  %s1330_s4 = smov [#allocation2]  }
  0x56   : > { %p1201_p1 = scmp.ne.s32.totalorder %s1507_s20, %s1200_s23  ;;  %s1205_s24 = sshll.u32 %s1330_s4, 4  ;;  %s1206_s24 = int_to_ptr.vmem [resolvable:$false] %s1205_s24 }
  0x57   : > { %s1207_s26 = scalar_lea.vmem %s1206_s24, 256  ;;  %p1208_p6 = scmp.lt.s32.totalorder %s1507_s20, %s1206_s24 }
  0x58   : > { %p1203_p2 = pnand %p1201_p1, %p1189_p7  ;;  %p1209_p10 = scmp.lt.s32.totalorder %s1207_s26, %s1200_s23 }
  0x5a   : > { %p1204_p9 = pneg %p1203_p2  ;;  %p1210_p4 = por %p1209_p10, %p1208_p6 }
  0x5c   : > { %p1211_p13 = pnand %p1210_p4, %p1204_p9 }
  0x5e   : > { %1214 = shalt.err (!%p1211_p13)
}
  0x5f   : > { %s1725_s2 = smov 4   ;;  %s1726_s7 = smov 64  }
  0x60   : > { %1055 = dma.hbm_to_vmem [thread:$0]  (!%p1503_p11), %s1500_s15, 128, %s1507_s20, %s1514_s17, %s1726_s7, %s1726_s7, %s1725_s2  }
  0x61   : > { %s322_s29 = scalar_lea.vmem [#allocation6], %s1495_s21  ;;  %s318_s10 = sand.u32 1, %s1323_s30  }
  0x62   : > { %s329_s16 = sshll.u32 %s322_s29, 4  ;;  %s319_s19 = scalar_lea.sflag [#allocation7], %s318_s10  ;;  %s1546_s16 = int_to_ptr.vmem [resolvable:$true] %s329_s16 }
  0x63   : > { %s1215_s23 = scalar_lea.hbm %s1512_s14, 128  ;;  %s1220_s26 = scalar_lea.hbm %s1690_s1, 256 }
  0x64   : > { %p1216_p1 = scmp.ne.s32.totalorder %s1512_s14, %s1215_s23  ;;  %p1221_p10 = scmp.lt.s32.totalorder %s1512_s14, %s1690_s1 }
  0x65   : > { %p1222_p12 = scmp.lt.s32.totalorder %s1220_s26, %s1215_s23 }
  0x66   : > { %p1218_p4 = pnand %p1216_p1, %p1189_p7 }
  0x67   : > { %p1223_p0 = por %p1222_p12, %p1221_p10 }
  0x68   : > { %p1219_p6 = pneg %p1218_p4 }
  0x6a   : > { %p1224_p5 = pnand %p1223_p0, %p1219_p6 }
  0x6c   : > { %1227 = shalt.err (!%p1224_p5)
}
  0x6d   : > { %s1228_s21 = scalar_lea.vmem %s1546_s16, 128  ;;  %s1331_s15 = smov [#allocation6]  }
  0x6e   : > { %p1229_p3 = scmp.ne.s32.totalorder %s1546_s16, %s1228_s21  ;;  %s1233_s20 = sshll.u32 %s1331_s15, 4  ;;  %s1234_s20 = int_to_ptr.vmem [resolvable:$false] %s1233_s20 }
  0x6f   : > { %s1235_s17 = scalar_lea.vmem %s1234_s20, 256  ;;  %p1236_p13 = scmp.lt.s32.totalorder %s1546_s16, %s1234_s20 }
  0x70   : > { %p1231_p2 = pnand %p1229_p3, %p1189_p7  ;;  %p1237_p1 = scmp.lt.s32.totalorder %s1235_s17, %s1228_s21 }
  0x72   : > { %p1232_p9 = pneg %p1231_p2  ;;  %p1238_p4 = por %p1237_p1, %p1236_p13 }
  0x74   : > { %p1239_p10 = pnand %p1238_p4, %p1232_p9 }
  0x76   : > { %1242 = shalt.err (!%p1239_p10)
}
  0x77   : > { %1058 = dma.hbm_to_vmem [thread:$0]  (!%p1503_p11), %s1512_s14, 128, %s1546_s16, %s319_s19, %s1726_s7, %s1726_s7, %s1725_s2  }
  0x78   : > { %341 = sbr.rel (%p1422_p8) target bundleno = 582 (0x246), region = 52  ;;  %s1576_s0 = sand.u32 (!%p1422_p8), 1, %s1315_s28  }
  0x79   : > { %s931_s18 = sshll.u32 (!%p1422_p8), %s1576_s0, 3  ;;  %s344_s29 = scalar_lea.sflag (!%p1422_p8), [#allocation3], %s1576_s0 }
  0x7a   : > { %s1580_s10 = scalar_lea.vmem (!%p1422_p8), [#allocation2], %s931_s18  ;;  %p1727_p7 = scmp.ne.s32.totalorder (!%p1422_p8), %s1713_s11, 0 }
  0x7d   : > { %1286 = dma.done.wait (%p1727_p7), %s344_s29, 128  }
  0x7e   : > { %1288 = vsyncadd (%p1727_p7), %s344_s29, 4294967168  ;;  %s352_s22 = sand.u32 1, %s1403_s9   ;;  %s356_s14 = scalar_lea.vmem [#allocation6], %s931_s18 }
  0x7f   : > { %s353_s13 = scalar_lea.sflag [#allocation7], %s352_s22 }
  0x80   : > { %1290 = dma.done.wait (%p1727_p7), %s353_s13, 128  }
  0x81   : > { %1292 = vsyncadd (%p1727_p7), %s353_s13, 4294967168  ;;  %p1728_p8 = scmp.eq.s32.totalorder %s1403_s9, 0 }
  0x83   : > { %1294 = dma.done.wait (%p1728_p8), [#allocation7], 512   ;;  %p1729_p11 = pmov %p1728_p8 }
  0x84   : > { %p1730_p6 = pmov %p1728_p8 }
  0x85   : > { %1296 = vsyncadd (%p1729_p11), [#allocation7], 4294966784 }
  0x86   : > { %1298 = dma.done.wait (%p1730_p6), [#allocation10], 256   ;;  %p1731_p12 = pmov %p1730_p6 }
  0x87   : > { %p1732_p0 = pmov %p1730_p6 }
  0x88   : > { %1300 = vsyncadd (%p1731_p12), [#allocation10], 4294967040 }
  0x89   : > { %1302 = dma.done.wait (%p1732_p0), [#allocation5], 16   ;;  %p1733_p5 = pmov %p1732_p0 }
  0x8b   : > { %1304 = vsyncadd (%p1733_p5), [#allocation5], 4294967280 }
  0x8c   : > { %373 = sfence }
  0x8d   : > { %v1112_v0 = vld [vmem:[#allocation8 + $0x18] sm:$0xff]   ;;  %v1332_v1 = vmov 0.0   ;;  %v1113_v2 = vld [vmem:[#allocation8 + $0x10] sm:$0xff]   ;;  %vm1333_vm0 = vmmov 0   ;;  %v1115_v3 = vld [vmem:[#allocation9 + $0x8] sm:$0xff]   ;;  %vm534_vm1 = vcmask 261120   ;;  %v583_v9 = vlaneseq }
  0x8e   : > { %980 = vmatprep.subr.bf16.mxu0 %v1332_v1  ;;  %992 = vmatprep.subr.bf16.mxu1 %v1332_v1  ;;  %v1117_v4 = vld [vmem:[#allocation9] sm:$0xff]   ;;  %v1114_v5 = vld [vmem:[#allocation8 + $0x8] sm:$0xff]   ;;  %v1119_v6 = vld [vmem:[%s356_s14] sm:$0xff]   ;;  %vm457_vm2 = vcmask 523264   ;;  %s589_s4 = sld [smem:[#allocation11]]  ;;  %s936_s26 = sshll.u32 %s1576_s0, 5 }
  0x8f   : > { %981 = vmatpush3.bf16.msra.mxu0 %v1112_v0  ;;  %988 = vmatprep.mubr.msk.bf16.mxu0 %vm1333_vm0, %v1332_v1  ;;  %v1116_v7 = vld [vmem:[#allocation8] sm:$0xff]   ;;  %v584_v10 = vshrl.u32 %v583_v9, 7  ;;  %s949_s24 = sld [smem:[#allocation11 + $0x1]]  ;;  %vm631_vm3 = vcmask 64512   ;;  %s406_s21 = scalar_lea.vmem [#allocation12], %s936_s26 }
  0x90   : > { %982 = vmatprep.subr.bf16.mxu0 %v1332_v1  ;;  %996 = vmatprep.mubr.msk.bf16.mxu1 %vm1333_vm0, %v1332_v1  ;;  %v1118_v8 = vld [vmem:[%s1580_s10] sm:$0xff]   ;;  %s791_s15 = sshll.u32 %s406_s21, 4  ;;  %s963_s20 = sshll.u32 %s1403_s9, 9  ;;  %s1639_s15 = int_to_ptr.vmem [resolvable:$true] %s791_s15 }
  0x91   : > { %993 = vmatpush3.bf16.msra.mxu1 %v1115_v3  ;;  %v944_v11 = vld [vmem:[%s1694_s5] ss:$0 sm:$0xff]  ;;  %v585_v16 = vsub.s32 0, %v584_v10  ;;  %v635_v17 = vsub.s32 1, %v584_v10  ;;  %s1644_s29 = scalar_lea.hbm %s1697_s8, %s963_s20  ;;  %s777_s9 = scalar_lea.sflag [#allocation4], %s1576_s0 }
  0x92   : > { %994 = vmatprep.subr.bf16.mxu1 %v1332_v1  ;;  %v937_v14 = vld [vmem:[%s1692_s3] ss:$0 sm:$0xff]  ;;  %s1243_s10 = scalar_lea.vmem %s1639_s15, 512  ;;  %p1734_p2 = scmp.ne.s32.totalorder %s1722_s25, 0 }
  0x93   : > { %983 = vmatpush3.bf16.msra.mxu0 %v1113_v2  ;;  %v581_v18 = vld [vmem:[%s1695_s6] sm:$0x3]  ;;  %p1244_p3 = scmp.ne.s32.totalorder %s1639_s15, %s1243_s10  ;;  %s1334_s22 = smov [#allocation12]  }
  0x94   : > { %984 = vmatprep.subr.bf16.mxu0 %v1332_v1  ;;  %v586_v24 = vrot.slane %v581_v18, %v585_v16  ;;  %v636_v25 = vrot.slane %v581_v18, %v635_v17  ;;  %v590_v44 = vstv %s589_s4  ;;  %s1247_s13 = sshll.u32 %s1334_s22, 4  ;;  %s1248_s13 = int_to_ptr.vmem [resolvable:$false] %s1247_s13 }
  0x95   : > { %995 = vmatpush3.bf16.msra.mxu1 %v1117_v4  ;;  %v640_v45 = vstv %s949_s24  ;;  %p1245_p9 = pnand %p1244_p3, %p1734_p2  ;;  %s1249_s14 = scalar_lea.vmem %s1248_s13, 1024 }
  0x96   : > { %1000 = vmatprep.subr.bf16.mxu1 %v1332_v1  ;;  %p1250_p1 = scmp.lt.s32.totalorder %s1639_s15, %s1248_s13  ;;  %p1251_p4 = scmp.lt.s32.totalorder %s1249_s14, %s1243_s10 }
  0x97   : > { %985 = vmatpush3.bf16.msra.mxu0 %v1114_v5  ;;  %p1246_p13 = pneg %p1245_p9 }
  0x98   : > { %986 = vmatprep.subr.bf16.mxu0 %v1332_v1  ;;  %997 = vmatmul.mubr.msk.bf16.vlgmr.msra.gmra.mxu1 %vm534_vm1, %v1119_v6  ;;  %p1252_p10 = por %p1251_p4, %p1250_p1 }
  0x99   : > { %1002 = vmatprep.mubr.msk.bf16.mxu1 %vm1333_vm0, %v1332_v1 }
  0x9a   : > { %p1253_p7 = pnand %p1252_p10, %p1246_p13 }
  0x9b   : > { %987 = vmatpush3.bf16.msra.mxu0 %v1116_v7 }
  0x9c   : > { %1006 = vmatprep.subr.bf16.mxu0 %v1332_v1 }
  0x9e   : > { %989 = vmatmul.mubr.msk.bf16.vlgmr.msra.gmra.mxu0 %vm457_vm2, %v1118_v8 }
  0x9f   : > { %1008 = vmatprep.mubr.msk.bf16.mxu0 %vm1333_vm0, %v1332_v1 }
 0x158   : > { %v572_v12 = vpop.f32.mrf.mxu1 }
 0x159   : > { %v573_v15 = vadd.f32 %v944_v11, %v572_v12 }
 0x15a   : > { %v998_v13 = vpop.f32.mrf.mxu1 }
 0x15b   : > { %v579_v23 = vmax.f32 %v573_v15, 0.0 }
 0x15c   : > { %v575_v19 = vpop.f32.mrf.mxu1 }
 0x15d   : > { %v587_v31 = vmul.f32 %v586_v24, %v579_v23  ;;  %v637_v32 = vmul.f32 %v636_v25, %v579_v23  ;;  %v576_v34 = vadd.f32 %v944_v11, %v575_v19 }
 0x15e   : > { %v495_v20 = vpop.f32.mrf.mxu0  ;;  %v999_v22 = vpop.f32.mrf.mxu1 }
 0x15f   : > { %v496_v21 = vadd.f32 %v937_v14, %v495_v20  ;;  %v588_v36 = vpack.c.bf16 %v587_v31, %v587_v31  ;;  %v638_v37 = vpack.c.bf16 %v637_v32, %v637_v32  ;;  %v580_v38 = vmax.f32 %v576_v34, 0.0 }
 0x160   : > { %v990_v26 = vpop.f32.mrf.mxu0 }
 0x161   : > { %v502_v27 = vmax.f32 %v496_v21, 0.0  ;;  %v684_v40 = vmul.f32 %v586_v24, %v580_v38  ;;  %v730_v41 = vmul.f32 %v636_v25, %v580_v38 }
 0x162   : > { %v498_v28 = vpop.f32.mrf.mxu0 }
 0x163   : > { %v582_v29 = vpack.c.bf16 %v502_v27, %v502_v27  ;;  %v499_v30 = vadd.f32 %v937_v14, %v498_v28  ;;  %v685_v42 = vpack.c.bf16 %v684_v40, %v684_v40  ;;  %v731_v43 = vpack.c.bf16 %v730_v41, %v730_v41 }
 0x164   : > { %v991_v33 = vpop.f32.mrf.mxu0 }
 0x165   : > { %1001 = vmatpush3.bf16.xpose.msra.mxu1 %v582_v29  ;;  %1007 = vmatpush3.bf16.xpose.msra.mxu0 %v582_v29  ;;  %v503_v35 = vmax.f32 %v499_v30, 0.0 }
 0x166   : > { %1012 = vmatprep.subr.bf16.mxu1 %v1332_v1  ;;  %1018 = vmatprep.subr.bf16.mxu0 %v1332_v1 }
 0x167   : > { %v683_v39 = vpack.c.bf16 %v503_v35, %v503_v35 }
 0x16c   : > { %1003 = vmatmul.mubr.bf16.vlgmr.msra.gmra.mxu1 %v588_v36  ;;  %1009 = vmatmul.mubr.bf16.vlgmr.msra.gmra.mxu0 %v638_v37 }
 0x16d   : > { %1013 = vmatpush3.bf16.xpose.msra.mxu1 %v683_v39  ;;  %1019 = vmatpush3.bf16.xpose.msra.mxu0 %v683_v39 }
 0x16e   : > { %1014 = vmatprep.mubr.msk.bf16.mxu1 %vm1333_vm0, %v1332_v1  ;;  %1020 = vmatprep.mubr.msk.bf16.mxu0 %vm1333_vm0, %v1332_v1 }
 0x174   : > { %1015 = vmatmul.mubr.bf16.vlgmr.msra.gmra.mxu1 %v685_v42  ;;  %1021 = vmatmul.mubr.bf16.vlgmr.msra.gmra.mxu0 %v731_v43 }
 0x22c   : > { %v625_v46 = vpop.f32.mrf.mxu1  ;;  %v675_v47 = vpop.f32.mrf.mxu0 }
 0x22d   : > { %v626_v48 = vadd.f32 %v625_v46, %v590_v44  ;;  %v676_v49 = vadd.f32 %v675_v47, %v640_v45 }
 0x22e   : > { %v1004_v50 = vpop.f32.mrf.mxu1  ;;  %v1010_v51 = vpop.f32.mrf.mxu0 }
 0x22f   : > { %632 = vst.msk [vmem:[%s406_s21] sm:$0xff] %vm631_vm3, %v626_v48  ;;  %950 = vst.msk [vmem:[%s406_s21 + $0x8] sm:$0xff] %vm631_vm3, %v676_v49 }
 0x230   : > { %v628_v52 = vpop.f32.mrf.mxu1  ;;  %v678_v53 = vpop.f32.mrf.mxu0 }
 0x232   : > { %v1005_v54 = vpop.f32.mrf.mxu1  ;;  %v1011_v55 = vpop.f32.mrf.mxu0 }
 0x234   : > { %v722_v56 = vpop.f32.mrf.mxu1  ;;  %v768_v57 = vpop.f32.mrf.mxu0 }
 0x235   : > { %v723_v58 = vadd.f32 %v722_v56, %v590_v44  ;;  %v769_v59 = vadd.f32 %v768_v57, %v640_v45 }
 0x236   : > { %v1016_v60 = vpop.f32.mrf.mxu1  ;;  %v1022_v61 = vpop.f32.mrf.mxu0 }
 0x237   : > { %951 = vst.msk [vmem:[%s406_s21 + $0x10] sm:$0xff] %vm631_vm3, %v723_v58  ;;  %953 = vst.msk [vmem:[%s406_s21 + $0x18] sm:$0xff] %vm631_vm3, %v769_v59 }
 0x238   : > { %v725_v62 = vpop.f32.mrf.mxu1  ;;  %v771_v63 = vpop.f32.mrf.mxu0 }
 0x239   : > { %1256 = shalt.err (!%p1253_p7)
}
 0x23a   : > { %s1257_s11 = scalar_lea.hbm %s1644_s29, 512  ;;  %s1261_s16 = scalar_lea.hbm %s1697_s8, 1024 }
 0x23b   : > { %p1258_p8 = scmp.ne.s32.totalorder %s1644_s29, %s1257_s11  ;;  %p1262_p12 = scmp.lt.s32.totalorder %s1644_s29, %s1697_s8 }
 0x23c   : > { %p1263_p0 = scmp.lt.s32.totalorder %s1261_s16, %s1257_s11 }
 0x23d   : > { %p1259_p11 = pnand %p1258_p8, %p1734_p2 }
 0x23e   : > { %p1264_p5 = por %p1263_p0, %p1262_p12 }
 0x23f   : > { %p1260_p6 = pneg %p1259_p11 }
 0x241   : > { %p1265_p3 = pnand %p1264_p5, %p1260_p6 }
 0x243   : > { %1268 = shalt.err (!%p1265_p3)
}
 0x244   : > { %s1335_s4 = smov 128   ;;  %s1336_s24 = smov 8   ;;  %v1017_v0 = vpop.f32.mrf.mxu1  ;;  %v1023_v1 = vpop.f32.mrf.mxu0 }
 0x245   : > { %1040 = dma.vmem_to_hbm [thread:$0]  (%p1734_p2), %s1639_s15, 512, %s1644_s29, %s777_s9, %s1335_s4, %s1335_s4, %s1336_s24  }
 0x246 PF: > { %s806_s26 = sand.u32 1, %s1311_s27   ;;  %p1735_p9 = scmp.ne.s32.totalorder %s1714_s12, 0 }
 0x247   : > { %p1736_p13 = scmp.ge.s32.totalorder %s1323_s30, 2  ;;  %s807_s21 = scalar_lea.sflag [#allocation4], %s806_s26 }
 0x249   : > { %p1060_p1 = pnand %p1736_p13, %p1735_p9 }
 0x24b   : > { %p1061_p4 = pneg %p1060_p1 }
 0x24d   : > { %1306 = dma.done.wait (%p1061_p4), %s807_s21, 512  }
 0x24e   : > { %1308 = vsyncadd (%p1061_p4), %s807_s21, 4294966784  ;;  %s1737_s30 = sld [smem:[#allocation20_spill]]  ;;  %s1740_s27 = smov %s1315_s28 }
 0x24f   : > { %s1738_s20 = sld [smem:[#allocation19_spill]] }
 0x250   : > { %s1739_s29 = sld [smem:[#allocation21_spill]] }
 0x254   : > { %p26_p2 = scmp.ge.s32.totalorder %s1737_s30, 4  }
 0x255   : > { %s1741_s28 = smov %s1738_s20 }
 0x256   :  { %28 = sbr.rel (!%p26_p2) target bundleno = 14 (0xe), region = 126 }
 0x25b   :  { %812 = vsyncpa [#allocation3], 1 }
 0x25c   :  { %814 = vsyncpa [#allocation3 + $0x1], 1 }
 0x25d   :  { %815 = vsyncpa [#allocation7], 1 }
 0x25e   :  { %817 = vsyncpa [#allocation7 + $0x1], 1 }
 0x25f   :  { %818 = vsyncpa [#allocation10], 1 }
 0x260   :  { %819 = vsyncpa [#allocation4], 1 }
 0x261   :  { %821 = vsyncpa [#allocation4 + $0x1], 1 }
 0x262   :  { %822 = vsyncpa [#allocation5], 1 }
 0x263   :  { %824 = vsyncpa [#allocation5 + $0x1], 1 }

</bundles_post_ra>
